<compile_context>
chip_gen: v5e
topology: v5e:2x2
jax: 0.10.0
libtpu: 0.0.40
codegen_flags: <defaults>
</compile_context>

<pallas_src>
import math

import jax
import jax.numpy as jnp
from jax import lax
from jax.experimental import pallas as pl
from jax.experimental.pallas import tpu as pltpu

_SUBLANE = 8    # f32 sublane tile
_LANE = 128     # lane tile


def _round_up(x, m):
    return (x + m - 1) // m * m


# ----------------------------------------------------------------------------
# Fused Pallas kernel: all LSTM layers + final Linear, one time-chunk per step
# ----------------------------------------------------------------------------
def _make_fused_lstm_kernel(num_layers, T_chunk, B_tile, H, O_pad,
                            mm_dtype, unroll):
    """kernel(x, (wih, whh, b)*L, w_fc, b_fc, out, gx, seq, h_st, c_st).

    x      : (T_chunk, B_tile, In)   time-major chunk of the input
    wih    : (In, 4H)   W_ih^T, gate column order [i, f, o, g]
    whh    : (H, 4H)    W_hh^T, same order
    b      : (1, 4H)    b_ih + b_hh, same order (f32)
    w_fc   : (H, O_pad) final projection weight (transposed, lane-padded)
    b_fc   : (1, O_pad)
    out    : (T_chunk, B_tile, O_pad)
    gx_scr : (T_chunk, B_tile, 4H)   VMEM: hoisted input-projection gates
    seq_scr: (T_chunk, B_tile, H)    VMEM: per-layer output sequence (chunk)
    h_scr  : (num_layers, B_tile, H) VMEM: hidden state carried across chunks
    c_scr  : (num_layers, B_tile, H) VMEM: cell state carried across chunks
    """
    H4 = 4 * H

    def kernel(*refs):
        idx = 0
        x_ref = refs[idx]; idx += 1
        layer_refs = []
        for _ in range(num_layers):
            layer_refs.append(refs[idx:idx + 3]); idx += 3
        w_fc_ref = refs[idx]; idx += 1
        b_fc_ref = refs[idx]; idx += 1
        out_ref = refs[idx]; idx += 1
        gx_scr = refs[idx]; idx += 1
        seq_scr = refs[idx]; idx += 1
        h_scr = refs[idx]; idx += 1
        c_scr = refs[idx]; idx += 1

        # First time-chunk of this batch tile: reset the recurrent state.
        @pl.when(pl.program_id(1) == 0)
        def _():
            h_scr[...] = jnp.zeros_like(h_scr)
            c_scr[...] = jnp.zeros_like(c_scr)

        cur = x_ref[...]                                  # (T_chunk, B_tile, In)
        for l in range(num_layers):
            wih_ref, whh_ref, b_ref = layer_refs[l]
            in_sz = cur.shape[2]

            # Hoisted, bias-folded input projection for the whole chunk:
            # one (T_chunk*B_tile, In) @ (In, 4H) MXU matmul.
            gx = jnp.dot(
                cur.reshape(T_chunk * B_tile, in_sz).astype(mm_dtype),
                wih_ref[...],
                preferred_element_type=jnp.float32) + b_ref[...]
            gx_scr[...] = gx.reshape(T_chunk, B_tile, H4)

            whh = whh_ref[...]            # (H, 4H), resident across the loop

            def step(t, hc, whh=whh):
                h, c = hc
                # tile-aligned per-step read: gx_scr[t] is (B_tile, 4H)
                gates = gx_scr[t] + jnp.dot(
                    h.astype(mm_dtype), whh,
                    preferred_element_type=jnp.float32)   # (B_tile, 4H)
                # grouped nonlinearities: 1 sigmoid over 3H, 1 tanh over H
                sig = jax.nn.sigmoid(gates[:, :3 * H])    # i | f | o
                g_new = jnp.tanh(gates[:, 3 * H:])
                i_g = sig[:, 0 * H:1 * H]
                f_g = sig[:, 1 * H:2 * H]
                o_g = sig[:, 2 * H:3 * H]
                c = f_g * c + i_g * g_new
                h = o_g * jnp.tanh(c)
                seq_scr[t] = h             # tile-aligned (B_tile, H) store
                return (h, c)

            h_fin, c_fin = lax.fori_loop(0, T_chunk, step,
                                         (h_scr[l], c_scr[l]), unroll=unroll)
            h_scr[l] = h_fin
            c_scr[l] = c_fin
            cur = seq_scr[...]                            # (T_chunk, B_tile, H)

        # Fused, lane-dense final Linear: (T_chunk*B_tile, H) @ (H, O_pad)
        out = jnp.dot(
            cur.reshape(T_chunk * B_tile, H).astype(mm_dtype),
            w_fc_ref[...],
            preferred_element_type=jnp.float32) + b_fc_ref[...]
        out_ref[...] = out.reshape(T_chunk, B_tile, O_pad).astype(out_ref.dtype)

    return kernel


# ----------------------------------------------------------------------------
# Wrapper
# ----------------------------------------------------------------------------
@jax.jit
def lstm_model_forward(x, params):
    """x: (B, T, input_size) -> (B, T, output_size).  h0 = c0 = 0."""
    lstm_layers = params["lstm"]
    num_layers = len(lstm_layers)
    B, T, In = x.shape
    H = lstm_layers[0]["whh_t"].shape[0]
    O = params["w_fc_t"].shape[1]
    mm_dtype = lstm_layers[0]["wih_t"].dtype

    # ---- static tiling decisions -------------------------------------------
    B_tile = _SUBLANE                    # 8 rows per batch tile (f32 sublanes)
    B_pad = _round_up(max(B, 1), B_tile)
    n_btiles = B_pad // B_tile           # "parallel" axis (v7x megacore)
    T_chunk = min(T, 32)                 # bounds VMEM; enables DMA pipelining
    T_pad = _round_up(T, T_chunk)
    n_chunks = T_pad // T_chunk          # "arbitrary" axis (recurrent carry)
    O_pad = _round_up(O, _LANE)          # lane-dense output stores
    unroll = min(T_chunk, 8)

    # time-major, batch/time-padded input slab: (T_pad, B_pad, In)
    x_tm = jnp.transpose(x, (1, 0, 2)).astype(jnp.float32)
    x_tm = jnp.pad(x_tm, ((0, T_pad - T), (0, B_pad - B), (0, 0)))

    # lane-pad the tiny FC to O_pad columns (sliced off below)
    w_fc = jnp.pad(params["w_fc_t"], ((0, 0), (0, O_pad - O)))
    b_fc = jnp.pad(params["b_fc"], ((0, 0), (0, O_pad - O)))

    inputs = [x_tm]
    in_specs = [pl.BlockSpec((T_chunk, B_tile, In),
                             lambda bi, ti: (ti, bi, 0))]
    for lay in lstm_layers:
        wih, whh, b = lay["wih_t"], lay["whh_t"], lay["b"]
        inputs += [wih, whh, b]
        in_specs += [
            pl.BlockSpec(wih.shape, lambda bi, ti: (0, 0)),   # weights stay
            pl.BlockSpec(whh.shape, lambda bi, ti: (0, 0)),   # resident in
            pl.BlockSpec(b.shape, lambda bi, ti: (0, 0)),     # VMEM (const idx)
        ]
    inputs += [w_fc, b_fc]
    in_specs += [
        pl.BlockSpec(w_fc.shape, lambda bi, ti: (0, 0)),
        pl.BlockSpec(b_fc.shape, lambda bi, ti: (0, 0)),
    ]

    kernel = _make_fused_lstm_kernel(num_layers, T_chunk, B_tile, H, O_pad,
                                     mm_dtype, unroll)

    out_slab = pl.pallas_call(
        kernel,
        out_shape=jax.ShapeDtypeStruct((T_pad, B_pad, O_pad), jnp.float32),
        grid_spec=pltpu.PrefetchScalarGridSpec(
            num_scalar_prefetch=0,
            grid=(n_btiles, n_chunks),
            in_specs=in_specs,
            out_specs=pl.BlockSpec((T_chunk, B_tile, O_pad),
                                   lambda bi, ti: (ti, bi, 0)),
            scratch_shapes=[
                pltpu.VMEM((T_chunk, B_tile, 4 * H), jnp.float32),  # gx
                pltpu.VMEM((T_chunk, B_tile, H), jnp.float32),      # layer seq
                pltpu.VMEM((num_layers, B_tile, H), jnp.float32),   # h carry
                pltpu.VMEM((num_layers, B_tile, H), jnp.float32),   # c carry
            ]),
        compiler_params=pltpu.CompilerParams(
            dimension_semantics=("parallel", "arbitrary"),
            vmem_limit_bytes=32 * 1024 * 1024),
    )(*inputs)

    out = out_slab[:T, :B, :O]                     # strip time/batch/lane pad
    return jnp.transpose(out, (1, 0, 2))           # (B, T, O)


# ----------------------------------------------------------------------------
# Parameter init (mirrors PyTorch's uniform(-1/sqrt(H), 1/sqrt(H)))
# ----------------------------------------------------------------------------
def _reorder_gates(w, H):
    """PyTorch gate row order [i, f, g, o] -> kernel order [i, f, o, g]."""
    i, f, g, o = w[:H], w[H:2 * H], w[2 * H:3 * H], w[3 * H:]
    return jnp.concatenate([i, f, o, g], axis=0)


def init_params(key, input_size, output_size, hidden_size, num_layers,
                matmul_dtype=jnp.float32):
    # matmul_dtype=jnp.bfloat16 halves weight VMEM/HBM traffic and unlocks the
    # bf16 MXU rate on v6e/v7x (f32 accumulation is kept inside the kernel).
    k = 1.0 / math.sqrt(hidden_size)
    H = hidden_size
    kernel_params = {"lstm": []}
    raw_params = {"lstm": []}
    in_sz = input_size
    for _ in range(num_layers):
        key, k1, k2, k3, k4 = jax.random.split(key, 5)
        w_ih = jax.random.uniform(k1, (4 * H, in_sz), jnp.float32, -k, k)
        w_hh = jax.random.uniform(k2, (4 * H, H), jnp.float32, -k, k)
        b_ih = jax.random.uniform(k3, (4 * H,), jnp.float32, -k, k)
        b_hh = jax.random.uniform(k4, (4 * H,), jnp.float32, -k, k)
        raw_params["lstm"].append(
            {"w_ih": w_ih, "w_hh": w_hh, "b_ih": b_ih, "b_hh": b_hh})
        kernel_params["lstm"].append({
            "wih_t": _reorder_gates(w_ih, H).T.astype(matmul_dtype),  # (In,4H)
            "whh_t": _reorder_gates(w_hh, H).T.astype(matmul_dtype),  # (H, 4H)
            "b": _reorder_gates((b_ih + b_hh)[:, None], H).T,         # (1, 4H)
        })
        in_sz = H
    key, k5, k6 = jax.random.split(key, 3)
    w_fc = jax.random.uniform(k5, (output_size, H), jnp.float32, -k, k)
    b_fc = jax.random.uniform(k6, (output_size,), jnp.float32, -k, k)
    raw_params["w_fc"] = w_fc
    raw_params["b_fc"] = b_fc
    kernel_params["w_fc_t"] = w_fc.T.astype(matmul_dtype)             # (H, O)
    kernel_params["b_fc"] = b_fc[None, :]                             # (1, O)
    return kernel_params, raw_params


# ----------------------------------------------------------------------------
# Pure-JAX reference in PyTorch conventions (gate order i, f, g, o)
# ----------------------------------------------------------------------------
def lstm_model_reference(x, raw):
    h_seq = jnp.transpose(x, (1, 0, 2)).astype(jnp.float32)  # (T, B, In)
    for lay in raw["lstm"]:
        w_ih, w_hh = lay["w_ih"], lay["w_hh"]
        b = lay["b_ih"] + lay["b_hh"]
        H = w_hh.shape[1]
        B = h_seq.shape[1]

        def step(carry, x_t, w_ih=w_ih, w_hh=w_hh, b=b, H=H):
            h_prev, c_prev = carry
            gates = x_t @ w_ih.T + h_prev @ w_hh.T + b
            i_g = jax.nn.sigmoid(gates[:, 0 * H:1 * H])
            f_g = jax.nn.sigmoid(gates[:, 1 * H:2 * H])
            g_g = jnp.tanh(gates[:, 2 * H:3 * H])
            o_g = jax.nn.sigmoid(gates[:, 3 * H:4 * H])
            c_new = f_g * c_prev + i_g * g_g
            h_new = o_g * jnp.tanh(c_new)
            return (h_new, c_new), h_new

        init = (jnp.zeros((B, H), jnp.float32), jnp.zeros((B, H), jnp.float32))
        _, h_seq = jax.lax.scan(step, init, h_seq)
    out = h_seq @ raw["w_fc"].T + raw["b_fc"]
    return jnp.transpose(out, (1, 0, 2))


# ----------------------------------------------------------------------------
if __name__ == "__main__":
    input_size, output_size, hidden_size, num_layers = 16, 8, 32, 2
    batch, seq = 2, 8

    key = jax.random.PRNGKey(0)
    key, pkey, xkey = jax.random.split(key, 3)
    params, raw = init_params(pkey, input_size, output_size, hidden_size,
                              num_layers)
    x = jax.random.normal(xkey, (batch, seq, input_size), jnp.float32)

    out = lstm_model_forward(x, params)
    out = jax.block_until_ready(out)

    ref = lstm_model_reference(x, raw)
    assert out.shape == (batch, seq, output_size), out.shape
    assert jnp.allclose(out, ref, atol=1e-5, rtol=1e-5), \
        float(jnp.max(jnp.abs(out - ref)))

    print("KERNEL_OK")
</pallas_src>

<mosaic_0001>
module attributes {stable_mosaic.version = 11 : i64} {
  func.func @kernel(%arg0: i32, %arg1: i32, %arg2: memref<8x8x16xf32, #tpu.memory_space<vmem>>, %arg3: memref<16x128xf32, #tpu.memory_space<vmem>>, %arg4: memref<32x128xf32, #tpu.memory_space<vmem>>, %arg5: memref<1x128xf32, #tpu.memory_space<vmem>>, %arg6: memref<32x128xf32, #tpu.memory_space<vmem>>, %arg7: memref<32x128xf32, #tpu.memory_space<vmem>>, %arg8: memref<1x128xf32, #tpu.memory_space<vmem>>, %arg9: memref<32x128xf32, #tpu.memory_space<vmem>>, %arg10: memref<1x128xf32, #tpu.memory_space<vmem>>, %arg11: memref<8x8x128xf32, #tpu.memory_space<vmem>>, %arg12: memref<8x8x128xf32, #tpu.memory_space<vmem>>, %arg13: memref<8x8x32xf32, #tpu.memory_space<vmem>>, %arg14: memref<2x8x32xf32, #tpu.memory_space<vmem>>, %arg15: memref<2x8x32xf32, #tpu.memory_space<vmem>>) attributes {dimension_semantics = [#tpu.dimension_semantics<parallel>, #tpu.dimension_semantics<arbitrary>], iteration_bounds = array<i64: 1, 1>, scalar_prefetch = 0 : i64, scratch_operands = 4 : i64, tpu.core_type = #tpu.core_type<tc>, window_params = [{transform_indices = @transform_0, window_bounds = array<i64: 8, 8, 16>}, {pipeline_mode = #tpu.pipeline_mode<synchronous>, transform_indices = @transform_1, window_bounds = array<i64: 16, 128>}, {pipeline_mode = #tpu.pipeline_mode<synchronous>, transform_indices = @transform_2, window_bounds = array<i64: 32, 128>}, {pipeline_mode = #tpu.pipeline_mode<synchronous>, transform_indices = @transform_3, window_bounds = array<i64: 1, 128>}, {pipeline_mode = #tpu.pipeline_mode<synchronous>, transform_indices = @transform_4, window_bounds = array<i64: 32, 128>}, {pipeline_mode = #tpu.pipeline_mode<synchronous>, transform_indices = @transform_5, window_bounds = array<i64: 32, 128>}, {pipeline_mode = #tpu.pipeline_mode<synchronous>, transform_indices = @transform_6, window_bounds = array<i64: 1, 128>}, {pipeline_mode = #tpu.pipeline_mode<synchronous>, transform_indices = @transform_7, window_bounds = array<i64: 32, 128>}, {pipeline_mode = #tpu.pipeline_mode<synchronous>, transform_indices = @transform_8, window_bounds = array<i64: 1, 128>}, {transform_indices = @transform_9, window_bounds = array<i64: 8, 8, 128>}]} {
    %c0_i32 = arith.constant 0 : i32
    %0 = arith.cmpi eq, %arg1, %c0_i32 : i32
    %1 = arith.extui %0 : i1 to i32
    %c0_i32_0 = arith.constant 0 : i32
    %2 = arith.cmpi ne, %1, %c0_i32_0 : i32
    scf.if %2 {
      %cst_165 = arith.constant 0.000000e+00 : f32
      %452 = vector.broadcast %cst_165 : f32 to vector<2x8x32xf32>
      %c0_166 = arith.constant 0 : index
      %c0_167 = arith.constant 0 : index
      %c0_168 = arith.constant 0 : index
      %453 = vector.load %arg14[%c0_166, %c0_167, %c0_168] : memref<2x8x32xf32, #tpu.memory_space<vmem>>, vector<2x8x32xf32>
      tpu.vector_store %arg14[%c0_166, %c0_167, %c0_168], %452 {strides = array<i32>} : memref<2x8x32xf32, #tpu.memory_space<vmem>>, vector<2x8x32xf32>,
      %cst_169 = arith.constant 0.000000e+00 : f32
      %454 = vector.broadcast %cst_169 : f32 to vector<2x8x32xf32>
      %c0_170 = arith.constant 0 : index
      %c0_171 = arith.constant 0 : index
      %c0_172 = arith.constant 0 : index
      %455 = vector.load %arg15[%c0_170, %c0_171, %c0_172] : memref<2x8x32xf32, #tpu.memory_space<vmem>>, vector<2x8x32xf32>
      tpu.vector_store %arg15[%c0_170, %c0_171, %c0_172], %454 {strides = array<i32>} : memref<2x8x32xf32, #tpu.memory_space<vmem>>, vector<2x8x32xf32>,
    } else {
    }
    %c0 = arith.constant 0 : index
    %c0_1 = arith.constant 0 : index
    %c0_2 = arith.constant 0 : index
    %3 = vector.load %arg2[%c0, %c0_1, %c0_2] : memref<8x8x16xf32, #tpu.memory_space<vmem>>, vector<8x8x16xf32>
    %4 = vector.shape_cast %3 : vector<8x8x16xf32> to vector<64x16xf32>
    %c0_3 = arith.constant 0 : index
    %c0_4 = arith.constant 0 : index
    %5 = vector.load %arg3[%c0_3, %c0_4] : memref<16x128xf32, #tpu.memory_space<vmem>>, vector<16x128xf32>
    %cst = arith.constant dense<0.000000e+00> : vector<64x128xf32>
    %6 = tpu.matmul %4, %5, %cst {dimension_numbers = #tpu.dot_dimension_numbers<[1], [0], [0], [1], [0, 0, 1, 1], [], []>} : vector<64x16xf32>, vector<16x128xf32>, vector<64x128xf32> -> vector<64x128xf32>
    %c0_5 = arith.constant 0 : index
    %c0_6 = arith.constant 0 : index
    %7 = vector.load %arg5[%c0_5, %c0_6] : memref<1x128xf32, #tpu.memory_space<vmem>>, vector<1x128xf32>
    %8 = vector.broadcast %7 : vector<1x128xf32> to vector<64x128xf32>
    %9 = arith.addf %6, %8 : vector<64x128xf32>
    %10 = vector.shape_cast %9 : vector<64x128xf32> to vector<8x8x128xf32>
    %c0_7 = arith.constant 0 : index
    %c0_8 = arith.constant 0 : index
    %c0_9 = arith.constant 0 : index
    %11 = vector.load %arg12[%c0_7, %c0_8, %c0_9] : memref<8x8x128xf32, #tpu.memory_space<vmem>>, vector<8x8x128xf32>
    tpu.vector_store %arg12[%c0_7, %c0_8, %c0_9], %10 {strides = array<i32>} : memref<8x8x128xf32, #tpu.memory_space<vmem>>, vector<8x8x128xf32>,
    %c0_10 = arith.constant 0 : index
    %c0_11 = arith.constant 0 : index
    %12 = vector.load %arg4[%c0_10, %c0_11] : memref<32x128xf32, #tpu.memory_space<vmem>>, vector<32x128xf32>
    %c0_12 = arith.constant 0 : index
    %c0_13 = arith.constant 0 : index
    %c0_14 = arith.constant 0 : index
    %13 = vector.load %arg14[%c0_12, %c0_13, %c0_14] : memref<2x8x32xf32, #tpu.memory_space<vmem>>, vector<1x8x32xf32>
    %14 = vector.shape_cast %13 : vector<1x8x32xf32> to vector<8x32xf32>
    %c0_15 = arith.constant 0 : index
    %c0_16 = arith.constant 0 : index
    %c0_17 = arith.constant 0 : index
    %15 = vector.load %arg15[%c0_15, %c0_16, %c0_17] : memref<2x8x32xf32, #tpu.memory_space<vmem>>, vector<1x8x32xf32>
    %16 = vector.shape_cast %15 : vector<1x8x32xf32> to vector<8x32xf32>
    %c0_i32_18 = arith.constant 0 : i32
    %17 = arith.index_cast %c0_i32_18 : i32 to index
    %c0_19 = arith.constant 0 : index
    %c0_20 = arith.constant 0 : index
    %18 = vector.load %arg12[%17, %c0_19, %c0_20] : memref<8x8x128xf32, #tpu.memory_space<vmem>>, vector<1x8x128xf32>
    %19 = vector.shape_cast %18 : vector<1x8x128xf32> to vector<8x128xf32>
    %cst_21 = arith.constant dense<0.000000e+00> : vector<8x128xf32>
    %20 = tpu.matmul %14, %12, %cst_21 {dimension_numbers = #tpu.dot_dimension_numbers<[1], [0], [0], [1], [0, 0, 1, 1], [], []>} : vector<8x32xf32>, vector<32x128xf32>, vector<8x128xf32> -> vector<8x128xf32>
    %21 = arith.addf %19, %20 : vector<8x128xf32>
    %22 = vector.extract_strided_slice %21 {offsets = [0, 0], sizes = [8, 96], strides = [1, 1]} : vector<8x128xf32> to vector<8x96xf32>
    %23 = arith.negf %22 : vector<8x96xf32>
    %24 = math.exp %23 : vector<8x96xf32>
    %cst_22 = arith.constant 1.000000e+00 : f32
    %25 = vector.broadcast %cst_22 : f32 to vector<8x96xf32>
    %26 = arith.addf %25, %24 : vector<8x96xf32>
    %27 = arith.divf %25, %26 : vector<8x96xf32>
    %28 = vector.extract_strided_slice %21 {offsets = [0, 96], sizes = [8, 32], strides = [1, 1]} : vector<8x128xf32> to vector<8x32xf32>
    %29 = math.tanh %28 : vector<8x32xf32>
    %30 = vector.extract_strided_slice %27 {offsets = [0, 0], sizes = [8, 32], strides = [1, 1]} : vector<8x96xf32> to vector<8x32xf32>
    %31 = vector.extract_strided_slice %27 {offsets = [0, 32], sizes = [8, 32], strides = [1, 1]} : vector<8x96xf32> to vector<8x32xf32>
    %32 = vector.extract_strided_slice %27 {offsets = [0, 64], sizes = [8, 32], strides = [1, 1]} : vector<8x96xf32> to vector<8x32xf32>
    %33 = arith.mulf %31, %16 : vector<8x32xf32>
    %34 = arith.mulf %30, %29 : vector<8x32xf32>
    %35 = arith.addf %33, %34 : vector<8x32xf32>
    %36 = math.tanh %35 : vector<8x32xf32>
    %37 = arith.mulf %32, %36 : vector<8x32xf32>
    %38 = arith.index_cast %c0_i32_18 : i32 to index
    %c0_23 = arith.constant 0 : index
    %c0_24 = arith.constant 0 : index
    %39 = vector.load %arg13[%38, %c0_23, %c0_24] : memref<8x8x32xf32, #tpu.memory_space<vmem>>, vector<1x8x32xf32>
    %40 = vector.shape_cast %39 : vector<1x8x32xf32> to vector<8x32xf32>
    %41 = vector.shape_cast %37 : vector<8x32xf32> to vector<1x8x32xf32>
    tpu.vector_store %arg13[%38, %c0_23, %c0_24], %41 {strides = array<i32>} : memref<8x8x32xf32, #tpu.memory_space<vmem>>, vector<1x8x32xf32>,
    %c1_i32 = arith.constant 1 : i32
    %42 = arith.index_cast %c1_i32 : i32 to index
    %c0_25 = arith.constant 0 : index
    %c0_26 = arith.constant 0 : index
    %43 = vector.load %arg12[%42, %c0_25, %c0_26] : memref<8x8x128xf32, #tpu.memory_space<vmem>>, vector<1x8x128xf32>
    %44 = vector.shape_cast %43 : vector<1x8x128xf32> to vector<8x128xf32>
    %cst_27 = arith.constant dense<0.000000e+00> : vector<8x128xf32>
    %45 = tpu.matmul %37, %12, %cst_27 {dimension_numbers = #tpu.dot_dimension_numbers<[1], [0], [0], [1], [0, 0, 1, 1], [], []>} : vector<8x32xf32>, vector<32x128xf32>, vector<8x128xf32> -> vector<8x128xf32>
    %46 = arith.addf %44, %45 : vector<8x128xf32>
    %47 = vector.extract_strided_slice %46 {offsets = [0, 0], sizes = [8, 96], strides = [1, 1]} : vector<8x128xf32> to vector<8x96xf32>
    %48 = arith.negf %47 : vector<8x96xf32>
    %49 = math.exp %48 : vector<8x96xf32>
    %cst_28 = arith.constant 1.000000e+00 : f32
    %50 = vector.broadcast %cst_28 : f32 to vector<8x96xf32>
    %51 = arith.addf %50, %49 : vector<8x96xf32>
    %52 = arith.divf %50, %51 : vector<8x96xf32>
    %53 = vector.extract_strided_slice %46 {offsets = [0, 96], sizes = [8, 32], strides = [1, 1]} : vector<8x128xf32> to vector<8x32xf32>
    %54 = math.tanh %53 : vector<8x32xf32>
    %55 = vector.extract_strided_slice %52 {offsets = [0, 0], sizes = [8, 32], strides = [1, 1]} : vector<8x96xf32> to vector<8x32xf32>
    %56 = vector.extract_strided_slice %52 {offsets = [0, 32], sizes = [8, 32], strides = [1, 1]} : vector<8x96xf32> to vector<8x32xf32>
    %57 = vector.extract_strided_slice %52 {offsets = [0, 64], sizes = [8, 32], strides = [1, 1]} : vector<8x96xf32> to vector<8x32xf32>
    %58 = arith.mulf %56, %35 : vector<8x32xf32>
    %59 = arith.mulf %55, %54 : vector<8x32xf32>
    %60 = arith.addf %58, %59 : vector<8x32xf32>
    %61 = math.tanh %60 : vector<8x32xf32>
    %62 = arith.mulf %57, %61 : vector<8x32xf32>
    %63 = arith.index_cast %c1_i32 : i32 to index
    %c0_29 = arith.constant 0 : index
    %c0_30 = arith.constant 0 : index
    %64 = vector.load %arg13[%63, %c0_29, %c0_30] : memref<8x8x32xf32, #tpu.memory_space<vmem>>, vector<1x8x32xf32>
    %65 = vector.shape_cast %64 : vector<1x8x32xf32> to vector<8x32xf32>
    %66 = vector.shape_cast %62 : vector<8x32xf32> to vector<1x8x32xf32>
    tpu.vector_store %arg13[%63, %c0_29, %c0_30], %66 {strides = array<i32>} : memref<8x8x32xf32, #tpu.memory_space<vmem>>, vector<1x8x32xf32>,
    %c2_i32 = arith.constant 2 : i32
    %67 = arith.index_cast %c2_i32 : i32 to index
    %c0_31 = arith.constant 0 : index
    %c0_32 = arith.constant 0 : index
    %68 = vector.load %arg12[%67, %c0_31, %c0_32] : memref<8x8x128xf32, #tpu.memory_space<vmem>>, vector<1x8x128xf32>
    %69 = vector.shape_cast %68 : vector<1x8x128xf32> to vector<8x128xf32>
    %cst_33 = arith.constant dense<0.000000e+00> : vector<8x128xf32>
    %70 = tpu.matmul %62, %12, %cst_33 {dimension_numbers = #tpu.dot_dimension_numbers<[1], [0], [0], [1], [0, 0, 1, 1], [], []>} : vector<8x32xf32>, vector<32x128xf32>, vector<8x128xf32> -> vector<8x128xf32>
    %71 = arith.addf %69, %70 : vector<8x128xf32>
    %72 = vector.extract_strided_slice %71 {offsets = [0, 0], sizes = [8, 96], strides = [1, 1]} : vector<8x128xf32> to vector<8x96xf32>
    %73 = arith.negf %72 : vector<8x96xf32>
    %74 = math.exp %73 : vector<8x96xf32>
    %cst_34 = arith.constant 1.000000e+00 : f32
    %75 = vector.broadcast %cst_34 : f32 to vector<8x96xf32>
    %76 = arith.addf %75, %74 : vector<8x96xf32>
    %77 = arith.divf %75, %76 : vector<8x96xf32>
    %78 = vector.extract_strided_slice %71 {offsets = [0, 96], sizes = [8, 32], strides = [1, 1]} : vector<8x128xf32> to vector<8x32xf32>
    %79 = math.tanh %78 : vector<8x32xf32>
    %80 = vector.extract_strided_slice %77 {offsets = [0, 0], sizes = [8, 32], strides = [1, 1]} : vector<8x96xf32> to vector<8x32xf32>
    %81 = vector.extract_strided_slice %77 {offsets = [0, 32], sizes = [8, 32], strides = [1, 1]} : vector<8x96xf32> to vector<8x32xf32>
    %82 = vector.extract_strided_slice %77 {offsets = [0, 64], sizes = [8, 32], strides = [1, 1]} : vector<8x96xf32> to vector<8x32xf32>
    %83 = arith.mulf %81, %60 : vector<8x32xf32>
    %84 = arith.mulf %80, %79 : vector<8x32xf32>
    %85 = arith.addf %83, %84 : vector<8x32xf32>
    %86 = math.tanh %85 : vector<8x32xf32>
    %87 = arith.mulf %82, %86 : vector<8x32xf32>
    %88 = arith.index_cast %c2_i32 : i32 to index
    %c0_35 = arith.constant 0 : index
    %c0_36 = arith.constant 0 : index
    %89 = vector.load %arg13[%88, %c0_35, %c0_36] : memref<8x8x32xf32, #tpu.memory_space<vmem>>, vector<1x8x32xf32>
    %90 = vector.shape_cast %89 : vector<1x8x32xf32> to vector<8x32xf32>
    %91 = vector.shape_cast %87 : vector<8x32xf32> to vector<1x8x32xf32>
    tpu.vector_store %arg13[%88, %c0_35, %c0_36], %91 {strides = array<i32>} : memref<8x8x32xf32, #tpu.memory_space<vmem>>, vector<1x8x32xf32>,
    %c3_i32 = arith.constant 3 : i32
    %92 = arith.index_cast %c3_i32 : i32 to index
    %c0_37 = arith.constant 0 : index
    %c0_38 = arith.constant 0 : index
    %93 = vector.load %arg12[%92, %c0_37, %c0_38] : memref<8x8x128xf32, #tpu.memory_space<vmem>>, vector<1x8x128xf32>
    %94 = vector.shape_cast %93 : vector<1x8x128xf32> to vector<8x128xf32>
    %cst_39 = arith.constant dense<0.000000e+00> : vector<8x128xf32>
    %95 = tpu.matmul %87, %12, %cst_39 {dimension_numbers = #tpu.dot_dimension_numbers<[1], [0], [0], [1], [0, 0, 1, 1], [], []>} : vector<8x32xf32>, vector<32x128xf32>, vector<8x128xf32> -> vector<8x128xf32>
    %96 = arith.addf %94, %95 : vector<8x128xf32>
    %97 = vector.extract_strided_slice %96 {offsets = [0, 0], sizes = [8, 96], strides = [1, 1]} : vector<8x128xf32> to vector<8x96xf32>
    %98 = arith.negf %97 : vector<8x96xf32>
    %99 = math.exp %98 : vector<8x96xf32>
    %cst_40 = arith.constant 1.000000e+00 : f32
    %100 = vector.broadcast %cst_40 : f32 to vector<8x96xf32>
    %101 = arith.addf %100, %99 : vector<8x96xf32>
    %102 = arith.divf %100, %101 : vector<8x96xf32>
    %103 = vector.extract_strided_slice %96 {offsets = [0, 96], sizes = [8, 32], strides = [1, 1]} : vector<8x128xf32> to vector<8x32xf32>
    %104 = math.tanh %103 : vector<8x32xf32>
    %105 = vector.extract_strided_slice %102 {offsets = [0, 0], sizes = [8, 32], strides = [1, 1]} : vector<8x96xf32> to vector<8x32xf32>
    %106 = vector.extract_strided_slice %102 {offsets = [0, 32], sizes = [8, 32], strides = [1, 1]} : vector<8x96xf32> to vector<8x32xf32>
    %107 = vector.extract_strided_slice %102 {offsets = [0, 64], sizes = [8, 32], strides = [1, 1]} : vector<8x96xf32> to vector<8x32xf32>
    %108 = arith.mulf %106, %85 : vector<8x32xf32>
    %109 = arith.mulf %105, %104 : vector<8x32xf32>
    %110 = arith.addf %108, %109 : vector<8x32xf32>
    %111 = math.tanh %110 : vector<8x32xf32>
    %112 = arith.mulf %107, %111 : vector<8x32xf32>
    %113 = arith.index_cast %c3_i32 : i32 to index
    %c0_41 = arith.constant 0 : index
    %c0_42 = arith.constant 0 : index
    %114 = vector.load %arg13[%113, %c0_41, %c0_42] : memref<8x8x32xf32, #tpu.memory_space<vmem>>, vector<1x8x32xf32>
    %115 = vector.shape_cast %114 : vector<1x8x32xf32> to vector<8x32xf32>
    %116 = vector.shape_cast %112 : vector<8x32xf32> to vector<1x8x32xf32>
    tpu.vector_store %arg13[%113, %c0_41, %c0_42], %116 {strides = array<i32>} : memref<8x8x32xf32, #tpu.memory_space<vmem>>, vector<1x8x32xf32>,
    %c4_i32 = arith.constant 4 : i32
    %117 = arith.index_cast %c4_i32 : i32 to index
    %c0_43 = arith.constant 0 : index
    %c0_44 = arith.constant 0 : index
    %118 = vector.load %arg12[%117, %c0_43, %c0_44] : memref<8x8x128xf32, #tpu.memory_space<vmem>>, vector<1x8x128xf32>
    %119 = vector.shape_cast %118 : vector<1x8x128xf32> to vector<8x128xf32>
    %cst_45 = arith.constant dense<0.000000e+00> : vector<8x128xf32>
    %120 = tpu.matmul %112, %12, %cst_45 {dimension_numbers = #tpu.dot_dimension_numbers<[1], [0], [0], [1], [0, 0, 1, 1], [], []>} : vector<8x32xf32>, vector<32x128xf32>, vector<8x128xf32> -> vector<8x128xf32>
    %121 = arith.addf %119, %120 : vector<8x128xf32>
    %122 = vector.extract_strided_slice %121 {offsets = [0, 0], sizes = [8, 96], strides = [1, 1]} : vector<8x128xf32> to vector<8x96xf32>
    %123 = arith.negf %122 : vector<8x96xf32>
    %124 = math.exp %123 : vector<8x96xf32>
    %cst_46 = arith.constant 1.000000e+00 : f32
    %125 = vector.broadcast %cst_46 : f32 to vector<8x96xf32>
    %126 = arith.addf %125, %124 : vector<8x96xf32>
    %127 = arith.divf %125, %126 : vector<8x96xf32>
    %128 = vector.extract_strided_slice %121 {offsets = [0, 96], sizes = [8, 32], strides = [1, 1]} : vector<8x128xf32> to vector<8x32xf32>
    %129 = math.tanh %128 : vector<8x32xf32>
    %130 = vector.extract_strided_slice %127 {offsets = [0, 0], sizes = [8, 32], strides = [1, 1]} : vector<8x96xf32> to vector<8x32xf32>
    %131 = vector.extract_strided_slice %127 {offsets = [0, 32], sizes = [8, 32], strides = [1, 1]} : vector<8x96xf32> to vector<8x32xf32>
    %132 = vector.extract_strided_slice %127 {offsets = [0, 64], sizes = [8, 32], strides = [1, 1]} : vector<8x96xf32> to vector<8x32xf32>
    %133 = arith.mulf %131, %110 : vector<8x32xf32>
    %134 = arith.mulf %130, %129 : vector<8x32xf32>
    %135 = arith.addf %133, %134 : vector<8x32xf32>
    %136 = math.tanh %135 : vector<8x32xf32>
    %137 = arith.mulf %132, %136 : vector<8x32xf32>
    %138 = arith.index_cast %c4_i32 : i32 to index
    %c0_47 = arith.constant 0 : index
    %c0_48 = arith.constant 0 : index
    %139 = vector.load %arg13[%138, %c0_47, %c0_48] : memref<8x8x32xf32, #tpu.memory_space<vmem>>, vector<1x8x32xf32>
    %140 = vector.shape_cast %139 : vector<1x8x32xf32> to vector<8x32xf32>
    %141 = vector.shape_cast %137 : vector<8x32xf32> to vector<1x8x32xf32>
    tpu.vector_store %arg13[%138, %c0_47, %c0_48], %141 {strides = array<i32>} : memref<8x8x32xf32, #tpu.memory_space<vmem>>, vector<1x8x32xf32>,
    %c5_i32 = arith.constant 5 : i32
    %142 = arith.index_cast %c5_i32 : i32 to index
    %c0_49 = arith.constant 0 : index
    %c0_50 = arith.constant 0 : index
    %143 = vector.load %arg12[%142, %c0_49, %c0_50] : memref<8x8x128xf32, #tpu.memory_space<vmem>>, vector<1x8x128xf32>
    %144 = vector.shape_cast %143 : vector<1x8x128xf32> to vector<8x128xf32>
    %cst_51 = arith.constant dense<0.000000e+00> : vector<8x128xf32>
    %145 = tpu.matmul %137, %12, %cst_51 {dimension_numbers = #tpu.dot_dimension_numbers<[1], [0], [0], [1], [0, 0, 1, 1], [], []>} : vector<8x32xf32>, vector<32x128xf32>, vector<8x128xf32> -> vector<8x128xf32>
    %146 = arith.addf %144, %145 : vector<8x128xf32>
    %147 = vector.extract_strided_slice %146 {offsets = [0, 0], sizes = [8, 96], strides = [1, 1]} : vector<8x128xf32> to vector<8x96xf32>
    %148 = arith.negf %147 : vector<8x96xf32>
    %149 = math.exp %148 : vector<8x96xf32>
    %cst_52 = arith.constant 1.000000e+00 : f32
    %150 = vector.broadcast %cst_52 : f32 to vector<8x96xf32>
    %151 = arith.addf %150, %149 : vector<8x96xf32>
    %152 = arith.divf %150, %151 : vector<8x96xf32>
    %153 = vector.extract_strided_slice %146 {offsets = [0, 96], sizes = [8, 32], strides = [1, 1]} : vector<8x128xf32> to vector<8x32xf32>
    %154 = math.tanh %153 : vector<8x32xf32>
    %155 = vector.extract_strided_slice %152 {offsets = [0, 0], sizes = [8, 32], strides = [1, 1]} : vector<8x96xf32> to vector<8x32xf32>
    %156 = vector.extract_strided_slice %152 {offsets = [0, 32], sizes = [8, 32], strides = [1, 1]} : vector<8x96xf32> to vector<8x32xf32>
    %157 = vector.extract_strided_slice %152 {offsets = [0, 64], sizes = [8, 32], strides = [1, 1]} : vector<8x96xf32> to vector<8x32xf32>
    %158 = arith.mulf %156, %135 : vector<8x32xf32>
    %159 = arith.mulf %155, %154 : vector<8x32xf32>
    %160 = arith.addf %158, %159 : vector<8x32xf32>
    %161 = math.tanh %160 : vector<8x32xf32>
    %162 = arith.mulf %157, %161 : vector<8x32xf32>
    %163 = arith.index_cast %c5_i32 : i32 to index
    %c0_53 = arith.constant 0 : index
    %c0_54 = arith.constant 0 : index
    %164 = vector.load %arg13[%163, %c0_53, %c0_54] : memref<8x8x32xf32, #tpu.memory_space<vmem>>, vector<1x8x32xf32>
    %165 = vector.shape_cast %164 : vector<1x8x32xf32> to vector<8x32xf32>
    %166 = vector.shape_cast %162 : vector<8x32xf32> to vector<1x8x32xf32>
    tpu.vector_store %arg13[%163, %c0_53, %c0_54], %166 {strides = array<i32>} : memref<8x8x32xf32, #tpu.memory_space<vmem>>, vector<1x8x32xf32>,
    %c6_i32 = arith.constant 6 : i32
    %167 = arith.index_cast %c6_i32 : i32 to index
    %c0_55 = arith.constant 0 : index
    %c0_56 = arith.constant 0 : index
    %168 = vector.load %arg12[%167, %c0_55, %c0_56] : memref<8x8x128xf32, #tpu.memory_space<vmem>>, vector<1x8x128xf32>
    %169 = vector.shape_cast %168 : vector<1x8x128xf32> to vector<8x128xf32>
    %cst_57 = arith.constant dense<0.000000e+00> : vector<8x128xf32>
    %170 = tpu.matmul %162, %12, %cst_57 {dimension_numbers = #tpu.dot_dimension_numbers<[1], [0], [0], [1], [0, 0, 1, 1], [], []>} : vector<8x32xf32>, vector<32x128xf32>, vector<8x128xf32> -> vector<8x128xf32>
    %171 = arith.addf %169, %170 : vector<8x128xf32>
    %172 = vector.extract_strided_slice %171 {offsets = [0, 0], sizes = [8, 96], strides = [1, 1]} : vector<8x128xf32> to vector<8x96xf32>
    %173 = arith.negf %172 : vector<8x96xf32>
    %174 = math.exp %173 : vector<8x96xf32>
    %cst_58 = arith.constant 1.000000e+00 : f32
    %175 = vector.broadcast %cst_58 : f32 to vector<8x96xf32>
    %176 = arith.addf %175, %174 : vector<8x96xf32>
    %177 = arith.divf %175, %176 : vector<8x96xf32>
    %178 = vector.extract_strided_slice %171 {offsets = [0, 96], sizes = [8, 32], strides = [1, 1]} : vector<8x128xf32> to vector<8x32xf32>
    %179 = math.tanh %178 : vector<8x32xf32>
    %180 = vector.extract_strided_slice %177 {offsets = [0, 0], sizes = [8, 32], strides = [1, 1]} : vector<8x96xf32> to vector<8x32xf32>
    %181 = vector.extract_strided_slice %177 {offsets = [0, 32], sizes = [8, 32], strides = [1, 1]} : vector<8x96xf32> to vector<8x32xf32>
    %182 = vector.extract_strided_slice %177 {offsets = [0, 64], sizes = [8, 32], strides = [1, 1]} : vector<8x96xf32> to vector<8x32xf32>
    %183 = arith.mulf %181, %160 : vector<8x32xf32>
    %184 = arith.mulf %180, %179 : vector<8x32xf32>
    %185 = arith.addf %183, %184 : vector<8x32xf32>
    %186 = math.tanh %185 : vector<8x32xf32>
    %187 = arith.mulf %182, %186 : vector<8x32xf32>
    %188 = arith.index_cast %c6_i32 : i32 to index
    %c0_59 = arith.constant 0 : index
    %c0_60 = arith.constant 0 : index
    %189 = vector.load %arg13[%188, %c0_59, %c0_60] : memref<8x8x32xf32, #tpu.memory_space<vmem>>, vector<1x8x32xf32>
    %190 = vector.shape_cast %189 : vector<1x8x32xf32> to vector<8x32xf32>
    %191 = vector.shape_cast %187 : vector<8x32xf32> to vector<1x8x32xf32>
    tpu.vector_store %arg13[%188, %c0_59, %c0_60], %191 {strides = array<i32>} : memref<8x8x32xf32, #tpu.memory_space<vmem>>, vector<1x8x32xf32>,
    %c7_i32 = arith.constant 7 : i32
    %192 = arith.index_cast %c7_i32 : i32 to index
    %c0_61 = arith.constant 0 : index
    %c0_62 = arith.constant 0 : index
    %193 = vector.load %arg12[%192, %c0_61, %c0_62] : memref<8x8x128xf32, #tpu.memory_space<vmem>>, vector<1x8x128xf32>
    %194 = vector.shape_cast %193 : vector<1x8x128xf32> to vector<8x128xf32>
    %cst_63 = arith.constant dense<0.000000e+00> : vector<8x128xf32>
    %195 = tpu.matmul %187, %12, %cst_63 {dimension_numbers = #tpu.dot_dimension_numbers<[1], [0], [0], [1], [0, 0, 1, 1], [], []>} : vector<8x32xf32>, vector<32x128xf32>, vector<8x128xf32> -> vector<8x128xf32>
    %196 = arith.addf %194, %195 : vector<8x128xf32>
    %197 = vector.extract_strided_slice %196 {offsets = [0, 0], sizes = [8, 96], strides = [1, 1]} : vector<8x128xf32> to vector<8x96xf32>
    %198 = arith.negf %197 : vector<8x96xf32>
    %199 = math.exp %198 : vector<8x96xf32>
    %cst_64 = arith.constant 1.000000e+00 : f32
    %200 = vector.broadcast %cst_64 : f32 to vector<8x96xf32>
    %201 = arith.addf %200, %199 : vector<8x96xf32>
    %202 = arith.divf %200, %201 : vector<8x96xf32>
    %203 = vector.extract_strided_slice %196 {offsets = [0, 96], sizes = [8, 32], strides = [1, 1]} : vector<8x128xf32> to vector<8x32xf32>
    %204 = math.tanh %203 : vector<8x32xf32>
    %205 = vector.extract_strided_slice %202 {offsets = [0, 0], sizes = [8, 32], strides = [1, 1]} : vector<8x96xf32> to vector<8x32xf32>
    %206 = vector.extract_strided_slice %202 {offsets = [0, 32], sizes = [8, 32], strides = [1, 1]} : vector<8x96xf32> to vector<8x32xf32>
    %207 = vector.extract_strided_slice %202 {offsets = [0, 64], sizes = [8, 32], strides = [1, 1]} : vector<8x96xf32> to vector<8x32xf32>
    %208 = arith.mulf %206, %185 : vector<8x32xf32>
    %209 = arith.mulf %205, %204 : vector<8x32xf32>
    %210 = arith.addf %208, %209 : vector<8x32xf32>
    %211 = math.tanh %210 : vector<8x32xf32>
    %212 = arith.mulf %207, %211 : vector<8x32xf32>
    %213 = arith.index_cast %c7_i32 : i32 to index
    %c0_65 = arith.constant 0 : index
    %c0_66 = arith.constant 0 : index
    %214 = vector.load %arg13[%213, %c0_65, %c0_66] : memref<8x8x32xf32, #tpu.memory_space<vmem>>, vector<1x8x32xf32>
    %215 = vector.shape_cast %214 : vector<1x8x32xf32> to vector<8x32xf32>
    %216 = vector.shape_cast %212 : vector<8x32xf32> to vector<1x8x32xf32>
    tpu.vector_store %arg13[%213, %c0_65, %c0_66], %216 {strides = array<i32>} : memref<8x8x32xf32, #tpu.memory_space<vmem>>, vector<1x8x32xf32>,
    %c8_i32 = arith.constant 8 : i32
    %c0_67 = arith.constant 0 : index
    %c0_68 = arith.constant 0 : index
    %c0_69 = arith.constant 0 : index
    %217 = vector.load %arg14[%c0_67, %c0_68, %c0_69] : memref<2x8x32xf32, #tpu.memory_space<vmem>>, vector<1x8x32xf32>
    %218 = vector.shape_cast %217 : vector<1x8x32xf32> to vector<8x32xf32>
    %219 = vector.shape_cast %212 : vector<8x32xf32> to vector<1x8x32xf32>
    tpu.vector_store %arg14[%c0_67, %c0_68, %c0_69], %219 {strides = array<i32>} : memref<2x8x32xf32, #tpu.memory_space<vmem>>, vector<1x8x32xf32>,
    %c0_70 = arith.constant 0 : index
    %c0_71 = arith.constant 0 : index
    %c0_72 = arith.constant 0 : index
    %220 = vector.load %arg15[%c0_70, %c0_71, %c0_72] : memref<2x8x32xf32, #tpu.memory_space<vmem>>, vector<1x8x32xf32>
    %221 = vector.shape_cast %220 : vector<1x8x32xf32> to vector<8x32xf32>
    %222 = vector.shape_cast %210 : vector<8x32xf32> to vector<1x8x32xf32>
    tpu.vector_store %arg15[%c0_70, %c0_71, %c0_72], %222 {strides = array<i32>} : memref<2x8x32xf32, #tpu.memory_space<vmem>>, vector<1x8x32xf32>,
    %c0_73 = arith.constant 0 : index
    %c0_74 = arith.constant 0 : index
    %c0_75 = arith.constant 0 : index
    %223 = vector.load %arg13[%c0_73, %c0_74, %c0_75] : memref<8x8x32xf32, #tpu.memory_space<vmem>>, vector<8x8x32xf32>
    %224 = vector.shape_cast %223 : vector<8x8x32xf32> to vector<64x32xf32>
    %c0_76 = arith.constant 0 : index
    %c0_77 = arith.constant 0 : index
    %225 = vector.load %arg6[%c0_76, %c0_77] : memref<32x128xf32, #tpu.memory_space<vmem>>, vector<32x128xf32>
    %cst_78 = arith.constant dense<0.000000e+00> : vector<64x128xf32>
    %226 = tpu.matmul %224, %225, %cst_78 {dimension_numbers = #tpu.dot_dimension_numbers<[1], [0], [0], [1], [0, 0, 1, 1], [], []>} : vector<64x32xf32>, vector<32x128xf32>, vector<64x128xf32> -> vector<64x128xf32>
    %c0_79 = arith.constant 0 : index
    %c0_80 = arith.constant 0 : index
    %227 = vector.load %arg8[%c0_79, %c0_80] : memref<1x128xf32, #tpu.memory_space<vmem>>, vector<1x128xf32>
    %228 = vector.broadcast %227 : vector<1x128xf32> to vector<64x128xf32>
    %229 = arith.addf %226, %228 : vector<64x128xf32>
    %230 = vector.shape_cast %229 : vector<64x128xf32> to vector<8x8x128xf32>
    %c0_81 = arith.constant 0 : index
    %c0_82 = arith.constant 0 : index
    %c0_83 = arith.constant 0 : index
    %231 = vector.load %arg12[%c0_81, %c0_82, %c0_83] : memref<8x8x128xf32, #tpu.memory_space<vmem>>, vector<8x8x128xf32>
    tpu.vector_store %arg12[%c0_81, %c0_82, %c0_83], %230 {strides = array<i32>} : memref<8x8x128xf32, #tpu.memory_space<vmem>>, vector<8x8x128xf32>,
    %c0_84 = arith.constant 0 : index
    %c0_85 = arith.constant 0 : index
    %232 = vector.load %arg7[%c0_84, %c0_85] : memref<32x128xf32, #tpu.memory_space<vmem>>, vector<32x128xf32>
    %c1 = arith.constant 1 : index
    %c0_86 = arith.constant 0 : index
    %c0_87 = arith.constant 0 : index
    %233 = vector.load %arg14[%c1, %c0_86, %c0_87] : memref<2x8x32xf32, #tpu.memory_space<vmem>>, vector<1x8x32xf32>
    %234 = vector.shape_cast %233 : vector<1x8x32xf32> to vector<8x32xf32>
    %c1_88 = arith.constant 1 : index
    %c0_89 = arith.constant 0 : index
    %c0_90 = arith.constant 0 : index
    %235 = vector.load %arg15[%c1_88, %c0_89, %c0_90] : memref<2x8x32xf32, #tpu.memory_space<vmem>>, vector<1x8x32xf32>
    %236 = vector.shape_cast %235 : vector<1x8x32xf32> to vector<8x32xf32>
    %c0_i32_91 = arith.constant 0 : i32
    %237 = arith.index_cast %c0_i32_91 : i32 to index
    %c0_92 = arith.constant 0 : index
    %c0_93 = arith.constant 0 : index
    %238 = vector.load %arg12[%237, %c0_92, %c0_93] : memref<8x8x128xf32, #tpu.memory_space<vmem>>, vector<1x8x128xf32>
    %239 = vector.shape_cast %238 : vector<1x8x128xf32> to vector<8x128xf32>
    %cst_94 = arith.constant dense<0.000000e+00> : vector<8x128xf32>
    %240 = tpu.matmul %234, %232, %cst_94 {dimension_numbers = #tpu.dot_dimension_numbers<[1], [0], [0], [1], [0, 0, 1, 1], [], []>} : vector<8x32xf32>, vector<32x128xf32>, vector<8x128xf32> -> vector<8x128xf32>
    %241 = arith.addf %239, %240 : vector<8x128xf32>
    %242 = vector.extract_strided_slice %241 {offsets = [0, 0], sizes = [8, 96], strides = [1, 1]} : vector<8x128xf32> to vector<8x96xf32>
    %243 = arith.negf %242 : vector<8x96xf32>
    %244 = math.exp %243 : vector<8x96xf32>
    %cst_95 = arith.constant 1.000000e+00 : f32
    %245 = vector.broadcast %cst_95 : f32 to vector<8x96xf32>
    %246 = arith.addf %245, %244 : vector<8x96xf32>
    %247 = arith.divf %245, %246 : vector<8x96xf32>
    %248 = vector.extract_strided_slice %241 {offsets = [0, 96], sizes = [8, 32], strides = [1, 1]} : vector<8x128xf32> to vector<8x32xf32>
    %249 = math.tanh %248 : vector<8x32xf32>
    %250 = vector.extract_strided_slice %247 {offsets = [0, 0], sizes = [8, 32], strides = [1, 1]} : vector<8x96xf32> to vector<8x32xf32>
    %251 = vector.extract_strided_slice %247 {offsets = [0, 32], sizes = [8, 32], strides = [1, 1]} : vector<8x96xf32> to vector<8x32xf32>
    %252 = vector.extract_strided_slice %247 {offsets = [0, 64], sizes = [8, 32], strides = [1, 1]} : vector<8x96xf32> to vector<8x32xf32>
    %253 = arith.mulf %251, %236 : vector<8x32xf32>
    %254 = arith.mulf %250, %249 : vector<8x32xf32>
    %255 = arith.addf %253, %254 : vector<8x32xf32>
    %256 = math.tanh %255 : vector<8x32xf32>
    %257 = arith.mulf %252, %256 : vector<8x32xf32>
    %258 = arith.index_cast %c0_i32_91 : i32 to index
    %c0_96 = arith.constant 0 : index
    %c0_97 = arith.constant 0 : index
    %259 = vector.load %arg13[%258, %c0_96, %c0_97] : memref<8x8x32xf32, #tpu.memory_space<vmem>>, vector<1x8x32xf32>
    %260 = vector.shape_cast %259 : vector<1x8x32xf32> to vector<8x32xf32>
    %261 = vector.shape_cast %257 : vector<8x32xf32> to vector<1x8x32xf32>
    tpu.vector_store %arg13[%258, %c0_96, %c0_97], %261 {strides = array<i32>} : memref<8x8x32xf32, #tpu.memory_space<vmem>>, vector<1x8x32xf32>,
    %c1_i32_98 = arith.constant 1 : i32
    %262 = arith.index_cast %c1_i32_98 : i32 to index
    %c0_99 = arith.constant 0 : index
    %c0_100 = arith.constant 0 : index
    %263 = vector.load %arg12[%262, %c0_99, %c0_100] : memref<8x8x128xf32, #tpu.memory_space<vmem>>, vector<1x8x128xf32>
    %264 = vector.shape_cast %263 : vector<1x8x128xf32> to vector<8x128xf32>
    %cst_101 = arith.constant dense<0.000000e+00> : vector<8x128xf32>
    %265 = tpu.matmul %257, %232, %cst_101 {dimension_numbers = #tpu.dot_dimension_numbers<[1], [0], [0], [1], [0, 0, 1, 1], [], []>} : vector<8x32xf32>, vector<32x128xf32>, vector<8x128xf32> -> vector<8x128xf32>
    %266 = arith.addf %264, %265 : vector<8x128xf32>
    %267 = vector.extract_strided_slice %266 {offsets = [0, 0], sizes = [8, 96], strides = [1, 1]} : vector<8x128xf32> to vector<8x96xf32>
    %268 = arith.negf %267 : vector<8x96xf32>
    %269 = math.exp %268 : vector<8x96xf32>
    %cst_102 = arith.constant 1.000000e+00 : f32
    %270 = vector.broadcast %cst_102 : f32 to vector<8x96xf32>
    %271 = arith.addf %270, %269 : vector<8x96xf32>
    %272 = arith.divf %270, %271 : vector<8x96xf32>
    %273 = vector.extract_strided_slice %266 {offsets = [0, 96], sizes = [8, 32], strides = [1, 1]} : vector<8x128xf32> to vector<8x32xf32>
    %274 = math.tanh %273 : vector<8x32xf32>
    %275 = vector.extract_strided_slice %272 {offsets = [0, 0], sizes = [8, 32], strides = [1, 1]} : vector<8x96xf32> to vector<8x32xf32>
    %276 = vector.extract_strided_slice %272 {offsets = [0, 32], sizes = [8, 32], strides = [1, 1]} : vector<8x96xf32> to vector<8x32xf32>
    %277 = vector.extract_strided_slice %272 {offsets = [0, 64], sizes = [8, 32], strides = [1, 1]} : vector<8x96xf32> to vector<8x32xf32>
    %278 = arith.mulf %276, %255 : vector<8x32xf32>
    %279 = arith.mulf %275, %274 : vector<8x32xf32>
    %280 = arith.addf %278, %279 : vector<8x32xf32>
    %281 = math.tanh %280 : vector<8x32xf32>
    %282 = arith.mulf %277, %281 : vector<8x32xf32>
    %283 = arith.index_cast %c1_i32_98 : i32 to index
    %c0_103 = arith.constant 0 : index
    %c0_104 = arith.constant 0 : index
    %284 = vector.load %arg13[%283, %c0_103, %c0_104] : memref<8x8x32xf32, #tpu.memory_space<vmem>>, vector<1x8x32xf32>
    %285 = vector.shape_cast %284 : vector<1x8x32xf32> to vector<8x32xf32>
    %286 = vector.shape_cast %282 : vector<8x32xf32> to vector<1x8x32xf32>
    tpu.vector_store %arg13[%283, %c0_103, %c0_104], %286 {strides = array<i32>} : memref<8x8x32xf32, #tpu.memory_space<vmem>>, vector<1x8x32xf32>,
    %c2_i32_105 = arith.constant 2 : i32
    %287 = arith.index_cast %c2_i32_105 : i32 to index
    %c0_106 = arith.constant 0 : index
    %c0_107 = arith.constant 0 : index
    %288 = vector.load %arg12[%287, %c0_106, %c0_107] : memref<8x8x128xf32, #tpu.memory_space<vmem>>, vector<1x8x128xf32>
    %289 = vector.shape_cast %288 : vector<1x8x128xf32> to vector<8x128xf32>
    %cst_108 = arith.constant dense<0.000000e+00> : vector<8x128xf32>
    %290 = tpu.matmul %282, %232, %cst_108 {dimension_numbers = #tpu.dot_dimension_numbers<[1], [0], [0], [1], [0, 0, 1, 1], [], []>} : vector<8x32xf32>, vector<32x128xf32>, vector<8x128xf32> -> vector<8x128xf32>
    %291 = arith.addf %289, %290 : vector<8x128xf32>
    %292 = vector.extract_strided_slice %291 {offsets = [0, 0], sizes = [8, 96], strides = [1, 1]} : vector<8x128xf32> to vector<8x96xf32>
    %293 = arith.negf %292 : vector<8x96xf32>
    %294 = math.exp %293 : vector<8x96xf32>
    %cst_109 = arith.constant 1.000000e+00 : f32
    %295 = vector.broadcast %cst_109 : f32 to vector<8x96xf32>
    %296 = arith.addf %295, %294 : vector<8x96xf32>
    %297 = arith.divf %295, %296 : vector<8x96xf32>
    %298 = vector.extract_strided_slice %291 {offsets = [0, 96], sizes = [8, 32], strides = [1, 1]} : vector<8x128xf32> to vector<8x32xf32>
    %299 = math.tanh %298 : vector<8x32xf32>
    %300 = vector.extract_strided_slice %297 {offsets = [0, 0], sizes = [8, 32], strides = [1, 1]} : vector<8x96xf32> to vector<8x32xf32>
    %301 = vector.extract_strided_slice %297 {offsets = [0, 32], sizes = [8, 32], strides = [1, 1]} : vector<8x96xf32> to vector<8x32xf32>
    %302 = vector.extract_strided_slice %297 {offsets = [0, 64], sizes = [8, 32], strides = [1, 1]} : vector<8x96xf32> to vector<8x32xf32>
    %303 = arith.mulf %301, %280 : vector<8x32xf32>
    %304 = arith.mulf %300, %299 : vector<8x32xf32>
    %305 = arith.addf %303, %304 : vector<8x32xf32>
    %306 = math.tanh %305 : vector<8x32xf32>
    %307 = arith.mulf %302, %306 : vector<8x32xf32>
    %308 = arith.index_cast %c2_i32_105 : i32 to index
    %c0_110 = arith.constant 0 : index
    %c0_111 = arith.constant 0 : index
    %309 = vector.load %arg13[%308, %c0_110, %c0_111] : memref<8x8x32xf32, #tpu.memory_space<vmem>>, vector<1x8x32xf32>
    %310 = vector.shape_cast %309 : vector<1x8x32xf32> to vector<8x32xf32>
    %311 = vector.shape_cast %307 : vector<8x32xf32> to vector<1x8x32xf32>
    tpu.vector_store %arg13[%308, %c0_110, %c0_111], %311 {strides = array<i32>} : memref<8x8x32xf32, #tpu.memory_space<vmem>>, vector<1x8x32xf32>,
    %c3_i32_112 = arith.constant 3 : i32
    %312 = arith.index_cast %c3_i32_112 : i32 to index
    %c0_113 = arith.constant 0 : index
    %c0_114 = arith.constant 0 : index
    %313 = vector.load %arg12[%312, %c0_113, %c0_114] : memref<8x8x128xf32, #tpu.memory_space<vmem>>, vector<1x8x128xf32>
    %314 = vector.shape_cast %313 : vector<1x8x128xf32> to vector<8x128xf32>
    %cst_115 = arith.constant dense<0.000000e+00> : vector<8x128xf32>
    %315 = tpu.matmul %307, %232, %cst_115 {dimension_numbers = #tpu.dot_dimension_numbers<[1], [0], [0], [1], [0, 0, 1, 1], [], []>} : vector<8x32xf32>, vector<32x128xf32>, vector<8x128xf32> -> vector<8x128xf32>
    %316 = arith.addf %314, %315 : vector<8x128xf32>
    %317 = vector.extract_strided_slice %316 {offsets = [0, 0], sizes = [8, 96], strides = [1, 1]} : vector<8x128xf32> to vector<8x96xf32>
    %318 = arith.negf %317 : vector<8x96xf32>
    %319 = math.exp %318 : vector<8x96xf32>
    %cst_116 = arith.constant 1.000000e+00 : f32
    %320 = vector.broadcast %cst_116 : f32 to vector<8x96xf32>
    %321 = arith.addf %320, %319 : vector<8x96xf32>
    %322 = arith.divf %320, %321 : vector<8x96xf32>
    %323 = vector.extract_strided_slice %316 {offsets = [0, 96], sizes = [8, 32], strides = [1, 1]} : vector<8x128xf32> to vector<8x32xf32>
    %324 = math.tanh %323 : vector<8x32xf32>
    %325 = vector.extract_strided_slice %322 {offsets = [0, 0], sizes = [8, 32], strides = [1, 1]} : vector<8x96xf32> to vector<8x32xf32>
    %326 = vector.extract_strided_slice %322 {offsets = [0, 32], sizes = [8, 32], strides = [1, 1]} : vector<8x96xf32> to vector<8x32xf32>
    %327 = vector.extract_strided_slice %322 {offsets = [0, 64], sizes = [8, 32], strides = [1, 1]} : vector<8x96xf32> to vector<8x32xf32>
    %328 = arith.mulf %326, %305 : vector<8x32xf32>
    %329 = arith.mulf %325, %324 : vector<8x32xf32>
    %330 = arith.addf %328, %329 : vector<8x32xf32>
    %331 = math.tanh %330 : vector<8x32xf32>
    %332 = arith.mulf %327, %331 : vector<8x32xf32>
    %333 = arith.index_cast %c3_i32_112 : i32 to index
    %c0_117 = arith.constant 0 : index
    %c0_118 = arith.constant 0 : index
    %334 = vector.load %arg13[%333, %c0_117, %c0_118] : memref<8x8x32xf32, #tpu.memory_space<vmem>>, vector<1x8x32xf32>
    %335 = vector.shape_cast %334 : vector<1x8x32xf32> to vector<8x32xf32>
    %336 = vector.shape_cast %332 : vector<8x32xf32> to vector<1x8x32xf32>
    tpu.vector_store %arg13[%333, %c0_117, %c0_118], %336 {strides = array<i32>} : memref<8x8x32xf32, #tpu.memory_space<vmem>>, vector<1x8x32xf32>,
    %c4_i32_119 = arith.constant 4 : i32
    %337 = arith.index_cast %c4_i32_119 : i32 to index
    %c0_120 = arith.constant 0 : index
    %c0_121 = arith.constant 0 : index
    %338 = vector.load %arg12[%337, %c0_120, %c0_121] : memref<8x8x128xf32, #tpu.memory_space<vmem>>, vector<1x8x128xf32>
    %339 = vector.shape_cast %338 : vector<1x8x128xf32> to vector<8x128xf32>
    %cst_122 = arith.constant dense<0.000000e+00> : vector<8x128xf32>
    %340 = tpu.matmul %332, %232, %cst_122 {dimension_numbers = #tpu.dot_dimension_numbers<[1], [0], [0], [1], [0, 0, 1, 1], [], []>} : vector<8x32xf32>, vector<32x128xf32>, vector<8x128xf32> -> vector<8x128xf32>
    %341 = arith.addf %339, %340 : vector<8x128xf32>
    %342 = vector.extract_strided_slice %341 {offsets = [0, 0], sizes = [8, 96], strides = [1, 1]} : vector<8x128xf32> to vector<8x96xf32>
    %343 = arith.negf %342 : vector<8x96xf32>
    %344 = math.exp %343 : vector<8x96xf32>
    %cst_123 = arith.constant 1.000000e+00 : f32
    %345 = vector.broadcast %cst_123 : f32 to vector<8x96xf32>
    %346 = arith.addf %345, %344 : vector<8x96xf32>
    %347 = arith.divf %345, %346 : vector<8x96xf32>
    %348 = vector.extract_strided_slice %341 {offsets = [0, 96], sizes = [8, 32], strides = [1, 1]} : vector<8x128xf32> to vector<8x32xf32>
    %349 = math.tanh %348 : vector<8x32xf32>
    %350 = vector.extract_strided_slice %347 {offsets = [0, 0], sizes = [8, 32], strides = [1, 1]} : vector<8x96xf32> to vector<8x32xf32>
    %351 = vector.extract_strided_slice %347 {offsets = [0, 32], sizes = [8, 32], strides = [1, 1]} : vector<8x96xf32> to vector<8x32xf32>
    %352 = vector.extract_strided_slice %347 {offsets = [0, 64], sizes = [8, 32], strides = [1, 1]} : vector<8x96xf32> to vector<8x32xf32>
    %353 = arith.mulf %351, %330 : vector<8x32xf32>
    %354 = arith.mulf %350, %349 : vector<8x32xf32>
    %355 = arith.addf %353, %354 : vector<8x32xf32>
    %356 = math.tanh %355 : vector<8x32xf32>
    %357 = arith.mulf %352, %356 : vector<8x32xf32>
    %358 = arith.index_cast %c4_i32_119 : i32 to index
    %c0_124 = arith.constant 0 : index
    %c0_125 = arith.constant 0 : index
    %359 = vector.load %arg13[%358, %c0_124, %c0_125] : memref<8x8x32xf32, #tpu.memory_space<vmem>>, vector<1x8x32xf32>
    %360 = vector.shape_cast %359 : vector<1x8x32xf32> to vector<8x32xf32>
    %361 = vector.shape_cast %357 : vector<8x32xf32> to vector<1x8x32xf32>
    tpu.vector_store %arg13[%358, %c0_124, %c0_125], %361 {strides = array<i32>} : memref<8x8x32xf32, #tpu.memory_space<vmem>>, vector<1x8x32xf32>,
    %c5_i32_126 = arith.constant 5 : i32
    %362 = arith.index_cast %c5_i32_126 : i32 to index
    %c0_127 = arith.constant 0 : index
    %c0_128 = arith.constant 0 : index
    %363 = vector.load %arg12[%362, %c0_127, %c0_128] : memref<8x8x128xf32, #tpu.memory_space<vmem>>, vector<1x8x128xf32>
    %364 = vector.shape_cast %363 : vector<1x8x128xf32> to vector<8x128xf32>
    %cst_129 = arith.constant dense<0.000000e+00> : vector<8x128xf32>
    %365 = tpu.matmul %357, %232, %cst_129 {dimension_numbers = #tpu.dot_dimension_numbers<[1], [0], [0], [1], [0, 0, 1, 1], [], []>} : vector<8x32xf32>, vector<32x128xf32>, vector<8x128xf32> -> vector<8x128xf32>
    %366 = arith.addf %364, %365 : vector<8x128xf32>
    %367 = vector.extract_strided_slice %366 {offsets = [0, 0], sizes = [8, 96], strides = [1, 1]} : vector<8x128xf32> to vector<8x96xf32>
    %368 = arith.negf %367 : vector<8x96xf32>
    %369 = math.exp %368 : vector<8x96xf32>
    %cst_130 = arith.constant 1.000000e+00 : f32
    %370 = vector.broadcast %cst_130 : f32 to vector<8x96xf32>
    %371 = arith.addf %370, %369 : vector<8x96xf32>
    %372 = arith.divf %370, %371 : vector<8x96xf32>
    %373 = vector.extract_strided_slice %366 {offsets = [0, 96], sizes = [8, 32], strides = [1, 1]} : vector<8x128xf32> to vector<8x32xf32>
    %374 = math.tanh %373 : vector<8x32xf32>
    %375 = vector.extract_strided_slice %372 {offsets = [0, 0], sizes = [8, 32], strides = [1, 1]} : vector<8x96xf32> to vector<8x32xf32>
    %376 = vector.extract_strided_slice %372 {offsets = [0, 32], sizes = [8, 32], strides = [1, 1]} : vector<8x96xf32> to vector<8x32xf32>
    %377 = vector.extract_strided_slice %372 {offsets = [0, 64], sizes = [8, 32], strides = [1, 1]} : vector<8x96xf32> to vector<8x32xf32>
    %378 = arith.mulf %376, %355 : vector<8x32xf32>
    %379 = arith.mulf %375, %374 : vector<8x32xf32>
    %380 = arith.addf %378, %379 : vector<8x32xf32>
    %381 = math.tanh %380 : vector<8x32xf32>
    %382 = arith.mulf %377, %381 : vector<8x32xf32>
    %383 = arith.index_cast %c5_i32_126 : i32 to index
    %c0_131 = arith.constant 0 : index
    %c0_132 = arith.constant 0 : index
    %384 = vector.load %arg13[%383, %c0_131, %c0_132] : memref<8x8x32xf32, #tpu.memory_space<vmem>>, vector<1x8x32xf32>
    %385 = vector.shape_cast %384 : vector<1x8x32xf32> to vector<8x32xf32>
    %386 = vector.shape_cast %382 : vector<8x32xf32> to vector<1x8x32xf32>
    tpu.vector_store %arg13[%383, %c0_131, %c0_132], %386 {strides = array<i32>} : memref<8x8x32xf32, #tpu.memory_space<vmem>>, vector<1x8x32xf32>,
    %c6_i32_133 = arith.constant 6 : i32
    %387 = arith.index_cast %c6_i32_133 : i32 to index
    %c0_134 = arith.constant 0 : index
    %c0_135 = arith.constant 0 : index
    %388 = vector.load %arg12[%387, %c0_134, %c0_135] : memref<8x8x128xf32, #tpu.memory_space<vmem>>, vector<1x8x128xf32>
    %389 = vector.shape_cast %388 : vector<1x8x128xf32> to vector<8x128xf32>
    %cst_136 = arith.constant dense<0.000000e+00> : vector<8x128xf32>
    %390 = tpu.matmul %382, %232, %cst_136 {dimension_numbers = #tpu.dot_dimension_numbers<[1], [0], [0], [1], [0, 0, 1, 1], [], []>} : vector<8x32xf32>, vector<32x128xf32>, vector<8x128xf32> -> vector<8x128xf32>
    %391 = arith.addf %389, %390 : vector<8x128xf32>
    %392 = vector.extract_strided_slice %391 {offsets = [0, 0], sizes = [8, 96], strides = [1, 1]} : vector<8x128xf32> to vector<8x96xf32>
    %393 = arith.negf %392 : vector<8x96xf32>
    %394 = math.exp %393 : vector<8x96xf32>
    %cst_137 = arith.constant 1.000000e+00 : f32
    %395 = vector.broadcast %cst_137 : f32 to vector<8x96xf32>
    %396 = arith.addf %395, %394 : vector<8x96xf32>
    %397 = arith.divf %395, %396 : vector<8x96xf32>
    %398 = vector.extract_strided_slice %391 {offsets = [0, 96], sizes = [8, 32], strides = [1, 1]} : vector<8x128xf32> to vector<8x32xf32>
    %399 = math.tanh %398 : vector<8x32xf32>
    %400 = vector.extract_strided_slice %397 {offsets = [0, 0], sizes = [8, 32], strides = [1, 1]} : vector<8x96xf32> to vector<8x32xf32>
    %401 = vector.extract_strided_slice %397 {offsets = [0, 32], sizes = [8, 32], strides = [1, 1]} : vector<8x96xf32> to vector<8x32xf32>
    %402 = vector.extract_strided_slice %397 {offsets = [0, 64], sizes = [8, 32], strides = [1, 1]} : vector<8x96xf32> to vector<8x32xf32>
    %403 = arith.mulf %401, %380 : vector<8x32xf32>
    %404 = arith.mulf %400, %399 : vector<8x32xf32>
    %405 = arith.addf %403, %404 : vector<8x32xf32>
    %406 = math.tanh %405 : vector<8x32xf32>
    %407 = arith.mulf %402, %406 : vector<8x32xf32>
    %408 = arith.index_cast %c6_i32_133 : i32 to index
    %c0_138 = arith.constant 0 : index
    %c0_139 = arith.constant 0 : index
    %409 = vector.load %arg13[%408, %c0_138, %c0_139] : memref<8x8x32xf32, #tpu.memory_space<vmem>>, vector<1x8x32xf32>
    %410 = vector.shape_cast %409 : vector<1x8x32xf32> to vector<8x32xf32>
    %411 = vector.shape_cast %407 : vector<8x32xf32> to vector<1x8x32xf32>
    tpu.vector_store %arg13[%408, %c0_138, %c0_139], %411 {strides = array<i32>} : memref<8x8x32xf32, #tpu.memory_space<vmem>>, vector<1x8x32xf32>,
    %c7_i32_140 = arith.constant 7 : i32
    %412 = arith.index_cast %c7_i32_140 : i32 to index
    %c0_141 = arith.constant 0 : index
    %c0_142 = arith.constant 0 : index
    %413 = vector.load %arg12[%412, %c0_141, %c0_142] : memref<8x8x128xf32, #tpu.memory_space<vmem>>, vector<1x8x128xf32>
    %414 = vector.shape_cast %413 : vector<1x8x128xf32> to vector<8x128xf32>
    %cst_143 = arith.constant dense<0.000000e+00> : vector<8x128xf32>
    %415 = tpu.matmul %407, %232, %cst_143 {dimension_numbers = #tpu.dot_dimension_numbers<[1], [0], [0], [1], [0, 0, 1, 1], [], []>} : vector<8x32xf32>, vector<32x128xf32>, vector<8x128xf32> -> vector<8x128xf32>
    %416 = arith.addf %414, %415 : vector<8x128xf32>
    %417 = vector.extract_strided_slice %416 {offsets = [0, 0], sizes = [8, 96], strides = [1, 1]} : vector<8x128xf32> to vector<8x96xf32>
    %418 = arith.negf %417 : vector<8x96xf32>
    %419 = math.exp %418 : vector<8x96xf32>
    %cst_144 = arith.constant 1.000000e+00 : f32
    %420 = vector.broadcast %cst_144 : f32 to vector<8x96xf32>
    %421 = arith.addf %420, %419 : vector<8x96xf32>
    %422 = arith.divf %420, %421 : vector<8x96xf32>
    %423 = vector.extract_strided_slice %416 {offsets = [0, 96], sizes = [8, 32], strides = [1, 1]} : vector<8x128xf32> to vector<8x32xf32>
    %424 = math.tanh %423 : vector<8x32xf32>
    %425 = vector.extract_strided_slice %422 {offsets = [0, 0], sizes = [8, 32], strides = [1, 1]} : vector<8x96xf32> to vector<8x32xf32>
    %426 = vector.extract_strided_slice %422 {offsets = [0, 32], sizes = [8, 32], strides = [1, 1]} : vector<8x96xf32> to vector<8x32xf32>
    %427 = vector.extract_strided_slice %422 {offsets = [0, 64], sizes = [8, 32], strides = [1, 1]} : vector<8x96xf32> to vector<8x32xf32>
    %428 = arith.mulf %426, %405 : vector<8x32xf32>
    %429 = arith.mulf %425, %424 : vector<8x32xf32>
    %430 = arith.addf %428, %429 : vector<8x32xf32>
    %431 = math.tanh %430 : vector<8x32xf32>
    %432 = arith.mulf %427, %431 : vector<8x32xf32>
    %433 = arith.index_cast %c7_i32_140 : i32 to index
    %c0_145 = arith.constant 0 : index
    %c0_146 = arith.constant 0 : index
    %434 = vector.load %arg13[%433, %c0_145, %c0_146] : memref<8x8x32xf32, #tpu.memory_space<vmem>>, vector<1x8x32xf32>
    %435 = vector.shape_cast %434 : vector<1x8x32xf32> to vector<8x32xf32>
    %436 = vector.shape_cast %432 : vector<8x32xf32> to vector<1x8x32xf32>
    tpu.vector_store %arg13[%433, %c0_145, %c0_146], %436 {strides = array<i32>} : memref<8x8x32xf32, #tpu.memory_space<vmem>>, vector<1x8x32xf32>,
    %c8_i32_147 = arith.constant 8 : i32
    %c1_148 = arith.constant 1 : index
    %c0_149 = arith.constant 0 : index
    %c0_150 = arith.constant 0 : index
    %437 = vector.load %arg14[%c1_148, %c0_149, %c0_150] : memref<2x8x32xf32, #tpu.memory_space<vmem>>, vector<1x8x32xf32>
    %438 = vector.shape_cast %437 : vector<1x8x32xf32> to vector<8x32xf32>
    %439 = vector.shape_cast %432 : vector<8x32xf32> to vector<1x8x32xf32>
    tpu.vector_store %arg14[%c1_148, %c0_149, %c0_150], %439 {strides = array<i32>} : memref<2x8x32xf32, #tpu.memory_space<vmem>>, vector<1x8x32xf32>,
    %c1_151 = arith.constant 1 : index
    %c0_152 = arith.constant 0 : index
    %c0_153 = arith.constant 0 : index
    %440 = vector.load %arg15[%c1_151, %c0_152, %c0_153] : memref<2x8x32xf32, #tpu.memory_space<vmem>>, vector<1x8x32xf32>
    %441 = vector.shape_cast %440 : vector<1x8x32xf32> to vector<8x32xf32>
    %442 = vector.shape_cast %430 : vector<8x32xf32> to vector<1x8x32xf32>
    tpu.vector_store %arg15[%c1_151, %c0_152, %c0_153], %442 {strides = array<i32>} : memref<2x8x32xf32, #tpu.memory_space<vmem>>, vector<1x8x32xf32>,
    %c0_154 = arith.constant 0 : index
    %c0_155 = arith.constant 0 : index
    %c0_156 = arith.constant 0 : index
    %443 = vector.load %arg13[%c0_154, %c0_155, %c0_156] : memref<8x8x32xf32, #tpu.memory_space<vmem>>, vector<8x8x32xf32>
    %444 = vector.shape_cast %443 : vector<8x8x32xf32> to vector<64x32xf32>
    %c0_157 = arith.constant 0 : index
    %c0_158 = arith.constant 0 : index
    %445 = vector.load %arg9[%c0_157, %c0_158] : memref<32x128xf32, #tpu.memory_space<vmem>>, vector<32x128xf32>
    %cst_159 = arith.constant dense<0.000000e+00> : vector<64x128xf32>
    %446 = tpu.matmul %444, %445, %cst_159 {dimension_numbers = #tpu.dot_dimension_numbers<[1], [0], [0], [1], [0, 0, 1, 1], [], []>} : vector<64x32xf32>, vector<32x128xf32>, vector<64x128xf32> -> vector<64x128xf32>
    %c0_160 = arith.constant 0 : index
    %c0_161 = arith.constant 0 : index
    %447 = vector.load %arg10[%c0_160, %c0_161] : memref<1x128xf32, #tpu.memory_space<vmem>>, vector<1x128xf32>
    %448 = vector.broadcast %447 : vector<1x128xf32> to vector<64x128xf32>
    %449 = arith.addf %446, %448 : vector<64x128xf32>
    %450 = vector.shape_cast %449 : vector<64x128xf32> to vector<8x8x128xf32>
    %c0_162 = arith.constant 0 : index
    %c0_163 = arith.constant 0 : index
    %c0_164 = arith.constant 0 : index
    %451 = vector.load %arg11[%c0_162, %c0_163, %c0_164] : memref<8x8x128xf32, #tpu.memory_space<vmem>>, vector<8x8x128xf32>
    tpu.vector_store %arg11[%c0_162, %c0_163, %c0_164], %450 {strides = array<i32>} : memref<8x8x128xf32, #tpu.memory_space<vmem>>, vector<8x8x128xf32>,
    return
  }
  func.func @transform_0(%arg0: i32, %arg1: i32) -> (i32, i32, i32) {
    %c0_i32 = arith.constant 0 : i32
    %c0_i32_0 = arith.constant 0 : i32
    return %arg1, %arg0, %c0_i32 : i32, i32, i32
  }
  func.func @transform_1(%arg0: i32, %arg1: i32) -> (i32, i32) {
    %c0_i32 = arith.constant 0 : i32
    %c0_i32_0 = arith.constant 0 : i32
    %c0_i32_1 = arith.constant 0 : i32
    return %c0_i32, %c0_i32_0 : i32, i32
  }
  func.func @transform_2(%arg0: i32, %arg1: i32) -> (i32, i32) {
    %c0_i32 = arith.constant 0 : i32
    %c0_i32_0 = arith.constant 0 : i32
    %c0_i32_1 = arith.constant 0 : i32
    return %c0_i32, %c0_i32_0 : i32, i32
  }
  func.func @transform_3(%arg0: i32, %arg1: i32) -> (i32, i32) {
    %c0_i32 = arith.constant 0 : i32
    %c0_i32_0 = arith.constant 0 : i32
    %c0_i32_1 = arith.constant 0 : i32
    return %c0_i32, %c0_i32_0 : i32, i32
  }
  func.func @transform_4(%arg0: i32, %arg1: i32) -> (i32, i32) {
    %c0_i32 = arith.constant 0 : i32
    %c0_i32_0 = arith.constant 0 : i32
    %c0_i32_1 = arith.constant 0 : i32
    return %c0_i32, %c0_i32_0 : i32, i32
  }
  func.func @transform_5(%arg0: i32, %arg1: i32) -> (i32, i32) {
    %c0_i32 = arith.constant 0 : i32
    %c0_i32_0 = arith.constant 0 : i32
    %c0_i32_1 = arith.constant 0 : i32
    return %c0_i32, %c0_i32_0 : i32, i32
  }
  func.func @transform_6(%arg0: i32, %arg1: i32) -> (i32, i32) {
    %c0_i32 = arith.constant 0 : i32
    %c0_i32_0 = arith.constant 0 : i32
    %c0_i32_1 = arith.constant 0 : i32
    return %c0_i32, %c0_i32_0 : i32, i32
  }
  func.func @transform_7(%arg0: i32, %arg1: i32) -> (i32, i32) {
    %c0_i32 = arith.constant 0 : i32
    %c0_i32_0 = arith.constant 0 : i32
    %c0_i32_1 = arith.constant 0 : i32
    return %c0_i32, %c0_i32_0 : i32, i32
  }
  func.func @transform_8(%arg0: i32, %arg1: i32) -> (i32, i32) {
    %c0_i32 = arith.constant 0 : i32
    %c0_i32_0 = arith.constant 0 : i32
    %c0_i32_1 = arith.constant 0 : i32
    return %c0_i32, %c0_i32_0 : i32, i32
  }
  func.func @transform_9(%arg0: i32, %arg1: i32) -> (i32, i32, i32) {
    %c0_i32 = arith.constant 0 : i32
    %c0_i32_0 = arith.constant 0 : i32
    return %arg1, %arg0, %c0_i32 : i32, i32, i32
  }
}

</mosaic_0001>

<bundles_post_ra>
// kernel: lstm_model_forward.1
= control target key start
LH: loop header
LB: loop body
LE: loop exit
PB: predicated region body
PF: predicated region fallthrough
CT: control target
= control target key end

     0   :  { %vm36_vm0 = vcmask 261120   ;;  %v1617_v3 = vmov 0.0   ;;  %vm55_vm1 = vcmask 130048   ;;  %s1618_s23 = smov 32   ;;  %s2066_s2 = inlined_call_operand.vmem [shape: f32[32,128], index: 2, kind: input, shape index: {}]   ;;  %s2067_s1 = inlined_call_operand.vmem [shape: f32[16,128], index: 1, kind: input, shape index: {}]   ;;  %s2068_s0 = inlined_call_operand.vmem [shape: f32[8,8,16], index: 0, kind: input, shape index: {}]   ;;  %s2069_s3 = inlined_call_operand.vmem [shape: f32[1,128], index: 3, kind: input, shape index: {}]   ;;  %s2070_s4 = inlined_call_operand.vmem [shape: f32[32,128], index: 4, kind: input, shape index: {}]   ;;  %s2071_s6 = inlined_call_operand.vmem [shape: f32[1,128], index: 6, kind: input, shape index: {}]   ;;  %s2072_s5 = inlined_call_operand.vmem [shape: f32[32,128], index: 5, kind: input, shape index: {}]   ;;  %s2073_s7 = inlined_call_operand.vmem [shape: f32[32,128], index: 7, kind: input, shape index: {}]   ;;  %s2074_s8 = inlined_call_operand.vmem [shape: f32[1,128], index: 8, kind: input, shape index: {}]   ;;  %s2075_s9 = inlined_call_operand.vmem [shape: f32[8,8,128], index: 9, kind: output, shape index: {}]  }
   0x1   :  { %v1674_v0 = vld [vmem:[%s2066_s2 + $0x18] sm:$0xff]  ;;  %v50_v1 = vld [vmem:[%s2067_s1 + $0x8] sm:$0xff]  ;;  %v1682_v2 = vld [vmem:[%s2066_s2 + $0x10] sm:$0xff]  ;;  %37 = vst.msk [vmem:[#allocation4] sm:$0xff] %vm36_vm0, %v1617_v3 }
   0x2   :  { %152 = vmatpush.msra.mxu1 %v1674_v0  ;;  %94 = vmatpush.msra.mxu0 %v50_v1  ;;  %v49_v4 = vld [vmem:[%s2067_s1] sm:$0xff]  ;;  %38 = vst.msk [vmem:[#allocation4 + $0x8] sm:$0xff] %vm36_vm0, %v1617_v3  ;;  %v1696_v6 = vld [vmem:[%s2066_s2 + $0x8] sm:$0xff] }
   0x3   :  { %v41_v5 = vld [vmem:[%s2068_s0] sm:$0xff]  ;;  %39 = vst.msk [vmem:[#allocation5] sm:$0xff] %vm36_vm0, %v1617_v3  ;;  %223 = vmatpush.msra.mxu2 %v1674_v0  ;;  %291 = vmatpush.msra.mxu3 %v1674_v0  ;;  %v42_v38 = vld [vmem:[%s2068_s0 + $0x8] sm:$0xff] }
   0x4   :  { %153 = vmatpush.msra.mxu1 %v1682_v2  ;;  %95 = vmatpush.msra.mxu0 %v49_v4  ;;  %40 = vst.msk [vmem:[#allocation5 + $0x8] sm:$0xff] %vm36_vm0, %v1617_v3  ;;  %v1707_v7 = vld [vmem:[%s2066_s2] sm:$0xff] }
   0x5   :  { %1418 = vmatmul.msk.f32.vlgmr.msra.gmra.mxu0 %vm55_vm1, %v41_v5  ;;  %224 = vmatpush.msra.mxu2 %v1682_v2  ;;  %v1737_v9 = vld [vmem:[%s2069_s3] ss:$0 sm:$0xff]  ;;  %s1619_s3 = smov 64  }
   0x6   :  { %154 = vmatpush.msra.mxu1 %v1696_v6  ;;  %292 = vmatpush.msra.mxu3 %v1682_v2 }
   0x7   :  { %225 = vmatpush.msra.mxu2 %v1696_v6 }
   0x8   :  { %155 = vmatpush.msra.mxu1 %v1707_v7  ;;  %v133_v8 = vld [vmem:[#allocation4] sm:$0xff]  ;;  %293 = vmatpush.msra.mxu3 %v1696_v6 }
   0x9   :  { %1426 = vmatmul.msk.f32.vlgmr.msra.gmra.mxu1 %vm36_vm0, %v133_v8  ;;  %226 = vmatpush.msra.mxu2 %v1707_v7 }
   0xa   :  { %294 = vmatpush.msra.mxu3 %v1707_v7  ;;  %359 = vmatpush.msrb.mxu1 %v1674_v0  ;;  %v134_v15 = vld [vmem:[#allocation5] sm:$0xff] }
   0xb   :  { %427 = vmatpush.msrb.mxu2 %v1674_v0 }
   0xc   :  { %495 = vmatpush.msrb.mxu3 %v1674_v0  ;;  %360 = vmatpush.msrb.mxu1 %v1682_v2 }
   0xd   :  { %428 = vmatpush.msrb.mxu2 %v1682_v2  ;;  %1419 = vmatmul.msk.f32.gmra.mxu0 %vm55_vm1, %v42_v38 }
   0xe   :  { %496 = vmatpush.msrb.mxu3 %v1682_v2  ;;  %361 = vmatpush.msrb.mxu1 %v1696_v6 }
   0xf   :  { %429 = vmatpush.msrb.mxu2 %v1696_v6 }
  0x10   :  { %497 = vmatpush.msrb.mxu3 %v1696_v6  ;;  %362 = vmatpush.msrb.mxu1 %v1707_v7 }
  0x11   :  { %430 = vmatpush.msrb.mxu2 %v1707_v7 }
  0x12   :  { %498 = vmatpush.msrb.mxu3 %v1707_v7  ;;  %563 = vmatpush.msra.mxu1 %v1674_v0 }
  0x14   :  { %564 = vmatpush.msra.mxu1 %v1682_v2 }
  0x16   :  { %565 = vmatpush.msra.mxu1 %v1696_v6 }
  0x18   :  { %566 = vmatpush.msra.mxu1 %v1707_v7 }
  0x82   :  { %v97_v10 = vpop.f32.mrf.mxu0 }
  0x83   :  { %v98_v11 = vadd.f32 %v1737_v9, %v97_v10 }
  0x86   :  { %v157_v12 = vpop.f32.mrf.mxu1 }
  0x87   :  { %v160_v13 = vadd.f32 %v157_v12, %v98_v11 }
  0x89   :  { %1489 = vtanh.f32 %v160_v13  ;;  %v1427_v16 = vmul.f32 -1.442695, %v160_v13 }
  0x8a   :  { %v100_v40 = vpop.f32.mrf.mxu0 }
  0x8b   :  { %1491 = vpow2.f32 %v1427_v16  ;;  %v101_v41 = vadd.f32 %v1737_v9, %v100_v40 }
  0x8f   :  { %v1490_v14 = vpop.eup %1489 }
  0x90   :  { %187 = vrot.lane.b32.xlu0 %v1490_v14, %s1618_s23 }
  0x91   :  { %v1492_v17 = vpop.eup %1491 }
  0x92   :  { %v164_v18 = vadd.f32 1.0, %v1492_v17 }
  0x94   :  { %1493 = vrcp.f32 %v164_v18  ;;  %v176_v24 = vand.u32 2147483648, %v164_v18  ;;  %vm170_vm3 = vweird.f32 %v164_v18  ;;  %v174_v25 = vand.u32 2147483647, %v164_v18 }
  0x96   :  { %v177_v27 = vor.u32 1.1754944e-38, %v176_v24  ;;  %vm175_vm5 = vcmp.eq.f32.partialorder %v174_v25, 8.507059e+37 }
  0x98   :  { %182 = vrot.lane.b32.xlu0 %v134_v15, %s1618_s23 }
  0x9a   :  { %v1494_v19 = vpop.eup %1493 }
  0x9b   :  { %v166_v20 = vmul.f32 %v1494_v19, %v164_v18  ;;  %vm171_vm2 = vweird.f32 %v1494_v19 }
  0x9c   :  { %vm172_vm4 = vmor %vm170_vm3, %vm171_vm2 }
  0x9d   :  { %v167_v21 = vsub.f32 1.0, %v166_v20 }
  0x9f   :  { %v168_v22 = vmul.f32 %v1494_v19, %v167_v21 }
  0xa1   :  { %v169_v23 = vadd.f32 %v1494_v19, %v168_v22 }
  0xa3   :  { %v173_v26 = vsel %vm172_vm4, %v1494_v19, %v169_v23 }
  0xa4   :  { %v178_v29 = vsel %vm175_vm5, %v177_v27, %v173_v26 }
 0x102   :  { %v188_v28 = vpop.permute.xlu0 %187 }
 0x103   :  { %v190_v30 = vmul.f32 %v188_v28, %v178_v29 }
 0x105   :  { %192 = vrot.lane.b32.xlu1 %v190_v30, %s1618_s23 }
 0x10a   :  { %v183_v31 = vpop.permute.xlu0 %182 }
 0x10b   :  { %v185_v32 = vmul.f32 %v183_v31, %v178_v29 }
 0x177   :  { %v193_v33 = vpop.permute.xlu1 %192 }
 0x178   :  { %v195_v34 = vadd.f32 %v193_v33, %v185_v32 }
 0x17a   :  { %1495 = vtanh.f32 %v195_v34 }
 0x180   :  { %v1496_v35 = vpop.eup %1495 }
 0x181   :  { %198 = vrot.lane.b32.xlu1 %v1496_v35, %s1618_s23 }
 0x1f3   :  { %v199_v36 = vpop.permute.xlu1 %198 }
 0x1f4   :  { %v201_v37 = vmul.f32 %v199_v36, %v178_v29  ;;  %v44_v29 = vld [vmem:[%s2068_s0 + $0x18] sm:$0xff] }
 0x1f6   :  { %203 = vrot.lane.b32.xlu2 %v201_v37, %s1619_s3 }
 0x250   :  { %v204_v39 = vpop.permute.xlu2 %203 }
 0x251   :  { %206 = vst.msk [vmem:[#allocation3] sm:$0xff] %vm36_vm0, %v204_v39  ;;  %1428 = vmatmul.msk.f32.vlgmr.msra.gmra.mxu2 %vm36_vm0, %v204_v39 }
 0x252   :  { %631 = vmatpush.msra.mxu2 %v1674_v0 }
 0x254   :  { %632 = vmatpush.msra.mxu2 %v1682_v2  ;;  %v43_v2 = vld [vmem:[%s2068_s0 + $0x10] sm:$0xff] }
 0x255   :  { %1420 = vmatmul.msk.f32.gmra.mxu0 %vm55_vm1, %v43_v2 }
 0x256   :  { %633 = vmatpush.msra.mxu2 %v1696_v6 }
 0x258   :  { %634 = vmatpush.msra.mxu2 %v1707_v7 }
 0x25d   :  { %1421 = vmatmul.msk.f32.gmra.mxu0 %vm55_vm1, %v44_v29 }
 0x2d2   :  { %v103_v4 = vpop.f32.mrf.mxu0 }
 0x2d3   :  { %v104_v5 = vadd.f32 %v1737_v9, %v103_v4 }
 0x2d4   :  { %v228_v42 = vpop.f32.mrf.mxu2 }
 0x2d5   :  { %v231_v43 = vadd.f32 %v228_v42, %v101_v41 }
 0x2d7   :  { %1497 = vtanh.f32 %v231_v43  ;;  %v1429_v45 = vmul.f32 -1.442695, %v231_v43 }
 0x2d9   :  { %1499 = vpow2.f32 %v1429_v45 }
 0x2da   :  { %v106_v33 = vpop.f32.mrf.mxu0 }
 0x2dd   :  { %v1498_v44 = vpop.eup %1497 }
 0x2de   :  { %254 = vrot.lane.b32.xlu2 %v1498_v44, %s1618_s23 }
 0x2df   :  { %v1500_v46 = vpop.eup %1499 }
 0x2e0   :  { %v235_v47 = vadd.f32 1.0, %v1500_v46 }
 0x2e2   :  { %1501 = vrcp.f32 %v235_v47  ;;  %v247_v53 = vand.u32 2147483648, %v235_v47  ;;  %vm241_vm7 = vweird.f32 %v235_v47  ;;  %v245_v54 = vand.u32 2147483647, %v235_v47 }
 0x2e4   :  { %v248_v56 = vor.u32 1.1754944e-38, %v247_v53  ;;  %vm246_vm9 = vcmp.eq.f32.partialorder %v245_v54, 8.507059e+37 }
 0x2e8   :  { %v1502_v48 = vpop.eup %1501 }
 0x2e9   :  { %v237_v49 = vmul.f32 %v1502_v48, %v235_v47  ;;  %vm242_vm6 = vweird.f32 %v1502_v48 }
 0x2ea   :  { %vm243_vm8 = vmor %vm241_vm7, %vm242_vm6 }
 0x2eb   :  { %v238_v50 = vsub.f32 1.0, %v237_v49 }
 0x2ed   :  { %v239_v51 = vmul.f32 %v1502_v48, %v238_v50 }
 0x2ef   :  { %v240_v52 = vadd.f32 %v1502_v48, %v239_v51 }
 0x2f1   :  { %v244_v55 = vsel %vm243_vm8, %v1502_v48, %v240_v52 }
 0x2f2   :  { %v249_v58 = vsel %vm246_vm9, %v248_v56, %v244_v55 }
 0x2f3   :  { %v252_v60 = vmul.f32 %v249_v58, %v195_v34  ;;  %v107_v34 = vadd.f32 %v1737_v9, %v106_v33 }
 0x338   :  { %v255_v57 = vpop.permute.xlu2 %254 }
 0x339   :  { %v257_v59 = vmul.f32 %v255_v57, %v249_v58 }
 0x33b   :  { %259 = vrot.lane.b32.xlu0 %v257_v59, %s1618_s23  ;;  %v45_v59 = vld [vmem:[%s2068_s0 + $0x20] sm:$0xff] }
 0x33c   :  { %1422 = vmatmul.msk.f32.gmra.mxu0 %vm55_vm1, %v45_v59  ;;  %v47_v59 = vld [vmem:[%s2068_s0 + $0x30] sm:$0xff] }
 0x3ad   :  { %v260_v61 = vpop.permute.xlu0 %259 }
 0x3ae   :  { %v262_v62 = vadd.f32 %v260_v61, %v252_v60 }
 0x3b0   :  { %1503 = vtanh.f32 %v262_v62 }
 0x3b6   :  { %v1504_v63 = vpop.eup %1503 }
 0x3b7   :  { %265 = vrot.lane.b32.xlu1 %v1504_v63, %s1618_s23 }
 0x3b9   :  { %v109_v61 = vpop.f32.mrf.mxu0 }
 0x429   :  { %v266_v0 = vpop.permute.xlu1 %265 }
 0x42a   :  { %v268_v1 = vmul.f32 %v266_v0, %v249_v58 }
 0x42c   :  { %270 = vrot.lane.b32.xlu2 %v268_v1, %s1619_s3 }
 0x486   :  { %v271_v3 = vpop.permute.xlu2 %270 }
 0x487   :  { %274 = vst.msk [vmem:[#allocation3 + $0x8] sm:$0xff] %vm36_vm0, %v271_v3  ;;  %1430 = vmatmul.msk.f32.vlgmr.msra.gmra.mxu3 %vm36_vm0, %v271_v3 }
 0x50a   :  { %v296_v6 = vpop.f32.mrf.mxu3 }
 0x50b   :  { %v299_v7 = vadd.f32 %v296_v6, %v104_v5 }
 0x50d   :  { %1505 = vtanh.f32 %v299_v7  ;;  %v1431_v10 = vmul.f32 -1.442695, %v299_v7 }
 0x50f   :  { %1507 = vpow2.f32 %v1431_v10 }
 0x513   :  { %v1506_v8 = vpop.eup %1505 }
 0x514   :  { %322 = vrot.lane.b32.xlu0 %v1506_v8, %s1618_s23 }
 0x515   :  { %v1508_v11 = vpop.eup %1507 }
 0x516   :  { %v303_v12 = vadd.f32 1.0, %v1508_v11 }
 0x518   :  { %1509 = vrcp.f32 %v303_v12  ;;  %v315_v18 = vand.u32 2147483648, %v303_v12  ;;  %vm309_vm11 = vweird.f32 %v303_v12  ;;  %v313_v19 = vand.u32 2147483647, %v303_v12 }
 0x51a   :  { %v316_v21 = vor.u32 1.1754944e-38, %v315_v18  ;;  %vm314_vm13 = vcmp.eq.f32.partialorder %v313_v19, 8.507059e+37 }
 0x51e   :  { %v1510_v13 = vpop.eup %1509 }
 0x51f   :  { %v305_v14 = vmul.f32 %v1510_v13, %v303_v12  ;;  %vm310_vm10 = vweird.f32 %v1510_v13 }
 0x520   :  { %vm311_vm12 = vmor %vm309_vm11, %vm310_vm10 }
 0x521   :  { %v306_v15 = vsub.f32 1.0, %v305_v14 }
 0x523   :  { %v307_v16 = vmul.f32 %v1510_v13, %v306_v15 }
 0x525   :  { %v308_v17 = vadd.f32 %v1510_v13, %v307_v16 }
 0x527   :  { %v312_v20 = vsel %vm311_vm12, %v1510_v13, %v308_v17 }
 0x528   :  { %v317_v23 = vsel %vm314_vm13, %v316_v21, %v312_v20 }
 0x529   :  { %v320_v25 = vmul.f32 %v317_v23, %v262_v62  ;;  %v110_v62 = vadd.f32 %v1737_v9, %v109_v61 }
 0x586   :  { %v323_v22 = vpop.permute.xlu0 %322 }
 0x587   :  { %v325_v24 = vmul.f32 %v323_v22, %v317_v23 }
 0x589   :  { %327 = vrot.lane.b32.xlu1 %v325_v24, %s1618_s23  ;;  %v700_v24 = vld [vmem:[%s2070_s4 + $0x18] sm:$0xff] }
 0x58a   :  { %741 = vmatpush.msra.mxu3 %v700_v24 }
 0x5fb   :  { %v328_v26 = vpop.permute.xlu1 %327 }
 0x5fc   :  { %v330_v27 = vadd.f32 %v328_v26, %v320_v25  ;;  %v699_v25 = vld [vmem:[%s2070_s4 + $0x10] sm:$0xff]  ;;  %v46_v26 = vld [vmem:[%s2068_s0 + $0x28] sm:$0xff] }
 0x5fd   :  { %1423 = vmatmul.msk.f32.gmra.mxu0 %vm55_vm1, %v46_v26  ;;  %742 = vmatpush.msra.mxu3 %v699_v25 }
 0x5fe   :  { %1511 = vtanh.f32 %v330_v27 }
 0x604   :  { %v1512_v28 = vpop.eup %1511 }
 0x605   :  { %333 = vrot.lane.b32.xlu2 %v1512_v28, %s1618_s23  ;;  %v697_v28 = vld [vmem:[%s2070_s4] sm:$0xff]  ;;  %1424 = vmatmul.msk.f32.gmra.mxu0 %vm55_vm1, %v47_v59 }
 0x65f   :  { %v334_v30 = vpop.permute.xlu2 %333 }
 0x660   :  { %v336_v31 = vmul.f32 %v334_v30, %v317_v23  ;;  %v689_v30 = vld [vmem:[#allocation3] sm:$0xff] }
 0x662   :  { %338 = vrot.lane.b32.xlu0 %v336_v31, %s1619_s3  ;;  %v690_v31 = vld [vmem:[#allocation3 + $0x8] sm:$0xff] }
 0x6d4   :  { %v339_v32 = vpop.permute.xlu0 %338 }
 0x6d5   :  { %342 = vst.msk [vmem:[#allocation3 + $0x10] sm:$0xff] %vm36_vm0, %v339_v32  ;;  %1432 = vmatmul.msk.f32.vlgmr.msrb.gmra.mxu1 %vm36_vm0, %v339_v32 }
 0x6dc   :  { %v691_v32 = vld [vmem:[#allocation3 + $0x10] sm:$0xff] }
 0x752   :  { %v364_v35 = vpop.f32.mrf.mxu1 }
 0x753   :  { %v367_v36 = vadd.f32 %v364_v35, %v107_v34  ;;  %v112_v35 = vpop.f32.mrf.mxu0 }
 0x755   :  { %1513 = vtanh.f32 %v367_v36  ;;  %v1433_v38 = vmul.f32 -1.442695, %v367_v36  ;;  %v113_v36 = vadd.f32 %v1737_v9, %v112_v35 }
 0x757   :  { %1515 = vpow2.f32 %v1433_v38 }
 0x75b   :  { %v1514_v37 = vpop.eup %1513 }
 0x75c   :  { %390 = vrot.lane.b32.xlu1 %v1514_v37, %s1618_s23 }
 0x75d   :  { %v1516_v39 = vpop.eup %1515 }
 0x75e   :  { %v371_v40 = vadd.f32 1.0, %v1516_v39 }
 0x760   :  { %1517 = vrcp.f32 %v371_v40  ;;  %v383_v46 = vand.u32 2147483648, %v371_v40  ;;  %vm377_vm15 = vweird.f32 %v371_v40  ;;  %v381_v47 = vand.u32 2147483647, %v371_v40 }
 0x762   :  { %v384_v49 = vor.u32 1.1754944e-38, %v383_v46  ;;  %vm382_vm3 = vcmp.eq.f32.partialorder %v381_v47, 8.507059e+37 }
 0x766   :  { %v1518_v41 = vpop.eup %1517 }
 0x767   :  { %v373_v42 = vmul.f32 %v1518_v41, %v371_v40  ;;  %vm378_vm14 = vweird.f32 %v1518_v41 }
 0x768   :  { %vm379_vm2 = vmor %vm377_vm15, %vm378_vm14 }
 0x769   :  { %v374_v43 = vsub.f32 1.0, %v373_v42 }
 0x76b   :  { %v375_v44 = vmul.f32 %v1518_v41, %v374_v43 }
 0x76d   :  { %v376_v45 = vadd.f32 %v1518_v41, %v375_v44 }
 0x76f   :  { %v380_v48 = vsel %vm379_vm2, %v1518_v41, %v376_v45 }
 0x770   :  { %v385_v51 = vsel %vm382_vm3, %v384_v49, %v380_v48 }
 0x771   :  { %v388_v53 = vmul.f32 %v385_v51, %v330_v27  ;;  %v698_v27 = vld [vmem:[%s2070_s4 + $0x8] sm:$0xff] }
 0x772   :  { %743 = vmatpush.msra.mxu3 %v698_v27 }
 0x774   :  { %744 = vmatpush.msra.mxu3 %v697_v28 }
 0x7ce   :  { %v391_v50 = vpop.permute.xlu1 %390 }
 0x7cf   :  { %v393_v52 = vmul.f32 %v391_v50, %v385_v51 }
 0x7d1   :  { %395 = vrot.lane.b32.xlu2 %v393_v52, %s1618_s23 }
 0x82b   :  { %v396_v54 = vpop.permute.xlu2 %395 }
 0x82c   :  { %v398_v55 = vadd.f32 %v396_v54, %v388_v53 }
 0x82e   :  { %1519 = vtanh.f32 %v398_v55 }
 0x834   :  { %v1520_v56 = vpop.eup %1519 }
 0x835   :  { %401 = vrot.lane.b32.xlu0 %v1520_v56, %s1618_s23 }
 0x8a7   :  { %v402_v57 = vpop.permute.xlu0 %401 }
 0x8a8   :  { %v404_v58 = vmul.f32 %v402_v57, %v385_v51 }
 0x8aa   :  { %406 = vrot.lane.b32.xlu1 %v404_v58, %s1619_s3 }
 0x91c   :  { %v407_v60 = vpop.permute.xlu1 %406 }
 0x91d   :  { %410 = vst.msk [vmem:[#allocation3 + $0x18] sm:$0xff] %vm36_vm0, %v407_v60  ;;  %1434 = vmatmul.msk.f32.vlgmr.msrb.gmra.mxu2 %vm36_vm0, %v407_v60 }
 0x924   :  { %v692_v33 = vld [vmem:[#allocation3 + $0x18] sm:$0xff] }
 0x9a0   :  { %v432_v63 = vpop.f32.mrf.mxu2 }
 0x9a1   :  { %v435_v0 = vadd.f32 %v432_v63, %v110_v62  ;;  %v1831_v62 = vld [vmem:[%s2072_s5 + $0x18] sm:$0xff]  ;;  %v1836_v63 = vld [vmem:[%s2072_s5 + $0x10] sm:$0xff] }
 0x9a2   :  { %802 = vmatpush.msrb.mxu1 %v1831_v62  ;;  %872 = vmatpush.msrb.mxu2 %v1831_v62 }
 0x9a3   :  { %1521 = vtanh.f32 %v435_v0  ;;  %v1435_v2 = vmul.f32 -1.442695, %v435_v0  ;;  %v1843_v0 = vld [vmem:[%s2072_s5 + $0x8] sm:$0xff] }
 0x9a4   :  { %803 = vmatpush.msrb.mxu1 %v1836_v63  ;;  %873 = vmatpush.msrb.mxu2 %v1836_v63 }
 0x9a5   :  { %1523 = vpow2.f32 %v1435_v2 }
 0x9a6   :  { %804 = vmatpush.msrb.mxu1 %v1843_v0  ;;  %874 = vmatpush.msrb.mxu2 %v1843_v0 }
 0x9a9   :  { %v1522_v1 = vpop.eup %1521 }
 0x9aa   :  { %458 = vrot.lane.b32.xlu2 %v1522_v1, %s1618_s23  ;;  %v1850_v1 = vld [vmem:[%s2072_s5] sm:$0xff]  ;;  %s1620_s5 = smov 96  }
 0x9ab   :  { %v1524_v3 = vpop.eup %1523  ;;  %805 = vmatpush.msrb.mxu1 %v1850_v1  ;;  %875 = vmatpush.msrb.mxu2 %v1850_v1 }
 0x9ac   :  { %v439_v4 = vadd.f32 1.0, %v1524_v3  ;;  %v783_v3 = vld [vmem:[#allocation4 + $0x8] sm:$0xff] }
 0x9ae   :  { %1525 = vrcp.f32 %v439_v4  ;;  %v451_v11 = vand.u32 2147483648, %v439_v4  ;;  %vm445_vm5 = vweird.f32 %v439_v4  ;;  %v449_v12 = vand.u32 2147483647, %v439_v4 }
 0x9b0   :  { %v452_v14 = vor.u32 1.1754944e-38, %v451_v11  ;;  %vm450_vm7 = vcmp.eq.f32.partialorder %v449_v12, 8.507059e+37 }
 0x9b4   :  { %v1526_v5 = vpop.eup %1525 }
 0x9b5   :  { %v441_v6 = vmul.f32 %v1526_v5, %v439_v4  ;;  %vm446_vm4 = vweird.f32 %v1526_v5 }
 0x9b6   :  { %vm447_vm6 = vmor %vm445_vm5, %vm446_vm4 }
 0x9b7   :  { %v442_v7 = vsub.f32 1.0, %v441_v6 }
 0x9b9   :  { %v443_v8 = vmul.f32 %v1526_v5, %v442_v7 }
 0x9bb   :  { %v444_v10 = vadd.f32 %v1526_v5, %v443_v8 }
 0x9bd   :  { %v448_v13 = vsel %vm447_vm6, %v1526_v5, %v444_v10  ;;  %v115_v5 = vpop.f32.mrf.mxu0  ;;  %v1872_v10 = vld [vmem:[%s2071_s6] ss:$0 sm:$0xff] }
 0x9be   :  { %v453_v16 = vsel %vm450_vm7, %v452_v14, %v448_v13  ;;  %v116_v6 = vadd.f32 %v1737_v9, %v115_v5  ;;  %v1915_v5 = vld [vmem:[%s2073_s7] sm:$0xff] }
 0x9bf   :  { %v456_v18 = vmul.f32 %v453_v16, %v398_v55 }
 0xa04   :  { %v459_v15 = vpop.permute.xlu2 %458 }
 0xa05   :  { %v461_v17 = vmul.f32 %v459_v15, %v453_v16 }
 0xa07   :  { %463 = vrot.lane.b32.xlu0 %v461_v17, %s1618_s23 }
 0xa79   :  { %v464_v19 = vpop.permute.xlu0 %463 }
 0xa7a   :  { %v466_v20 = vadd.f32 %v464_v19, %v456_v18 }
 0xa7c   :  { %1527 = vtanh.f32 %v466_v20 }
 0xa82   :  { %v1528_v21 = vpop.eup %1527 }
 0xa83   :  { %469 = vrot.lane.b32.xlu1 %v1528_v21, %s1618_s23 }
 0xaf5   :  { %v470_v22 = vpop.permute.xlu1 %469 }
 0xaf6   :  { %v472_v23 = vmul.f32 %v470_v22, %v453_v16  ;;  %v785_v16 = vld [vmem:[#allocation5 + $0x8] sm:$0xff] }
 0xaf8   :  { %474 = vrot.lane.b32.xlu2 %v472_v23, %s1619_s3 }
 0xb52   :  { %v475_v29 = vpop.permute.xlu2 %474 }
 0xb53   :  { %478 = vst.msk [vmem:[#allocation3 + $0x20] sm:$0xff] %vm36_vm0, %v475_v29  ;;  %1436 = vmatmul.msk.f32.vlgmr.msrb.gmra.mxu3 %vm36_vm0, %v475_v29 }
 0xb5a   :  { %v693_v34 = vld [vmem:[#allocation3 + $0x20] sm:$0xff] }
 0xb5b   :  { %1442 = vmatmul.msk.f32.vlgmr.msra.gmra.mxu3 %vm36_vm0, %v689_v30 }
 0xb63   :  { %1443 = vmatmul.msk.f32.gmra.mxu3 %vm36_vm0, %v690_v31 }
 0xb6b   :  { %1444 = vmatmul.msk.f32.gmra.mxu3 %vm36_vm0, %v691_v32 }
 0xb73   :  { %1445 = vmatmul.msk.f32.gmra.mxu3 %vm36_vm0, %v692_v33 }
 0xb7b   :  { %1446 = vmatmul.msk.f32.gmra.mxu3 %vm36_vm0, %v693_v34 }
 0xbd6   :  { %v500_v37 = vpop.f32.mrf.mxu3 }
 0xbd7   :  { %v503_v38 = vadd.f32 %v500_v37, %v113_v36 }
 0xbd9   :  { %1529 = vtanh.f32 %v503_v38  ;;  %v1437_v40 = vmul.f32 -1.442695, %v503_v38 }
 0xbdb   :  { %1531 = vpow2.f32 %v1437_v40 }
 0xbde   :  { %v746_v11 = vpop.f32.mrf.mxu3 }
 0xbdf   :  { %v1530_v39 = vpop.eup %1529  ;;  %v747_v12 = vadd.f32 %v1872_v10, %v746_v11 }
 0xbe0   :  { %526 = vrot.lane.b32.xlu0 %v1530_v39, %s1618_s23 }
 0xbe1   :  { %v1532_v41 = vpop.eup %1531 }
 0xbe2   :  { %v507_v42 = vadd.f32 1.0, %v1532_v41 }
 0xbe4   :  { %1533 = vrcp.f32 %v507_v42  ;;  %v519_v48 = vand.u32 2147483648, %v507_v42  ;;  %vm513_vm9 = vweird.f32 %v507_v42  ;;  %v517_v49 = vand.u32 2147483647, %v507_v42 }
 0xbe6   :  { %v520_v51 = vor.u32 1.1754944e-38, %v519_v48  ;;  %vm518_vm11 = vcmp.eq.f32.partialorder %v517_v49, 8.507059e+37 }
 0xbea   :  { %v1534_v43 = vpop.eup %1533 }
 0xbeb   :  { %v509_v44 = vmul.f32 %v1534_v43, %v507_v42  ;;  %vm514_vm8 = vweird.f32 %v1534_v43 }
 0xbec   :  { %vm515_vm10 = vmor %vm513_vm9, %vm514_vm8 }
 0xbed   :  { %v510_v45 = vsub.f32 1.0, %v509_v44 }
 0xbef   :  { %v511_v46 = vmul.f32 %v1534_v43, %v510_v45 }
 0xbf1   :  { %v512_v47 = vadd.f32 %v1534_v43, %v511_v46 }
 0xbf3   :  { %v516_v50 = vsel %vm515_vm10, %v1534_v43, %v512_v47 }
 0xbf4   :  { %v521_v53 = vsel %vm518_vm11, %v520_v51, %v516_v50 }
 0xbf5   :  { %v524_v55 = vmul.f32 %v521_v53, %v466_v20 }
 0xc52   :  { %v527_v52 = vpop.permute.xlu0 %526 }
 0xc53   :  { %v529_v54 = vmul.f32 %v527_v52, %v521_v53 }
 0xc55   :  { %531 = vrot.lane.b32.xlu1 %v529_v54, %s1618_s23 }
 0xcc7   :  { %v532_v56 = vpop.permute.xlu1 %531 }
 0xcc8   :  { %v1819_v57 = vadd.f32 %v532_v56, %v524_v55 }
 0xcca   :  { %1535 = vtanh.f32 %v1819_v57 }
 0xcd0   :  { %v1536_v58 = vpop.eup %1535 }
 0xcd1   :  { %537 = vrot.lane.b32.xlu2 %v1536_v58, %s1618_s23 }
 0xd2b   :  { %v538_v60 = vpop.permute.xlu2 %537 }
 0xd2c   :  { %v540_v61 = vmul.f32 %v538_v60, %v521_v53 }
 0xd2e   :  { %542 = vrot.lane.b32.xlu0 %v540_v61, %s1619_s3 }
 0xda0   :  { %v543_v2 = vpop.permute.xlu0 %542 }
 0xda1   :  { %546 = vst.msk [vmem:[#allocation3 + $0x28] sm:$0xff] %vm36_vm0, %v543_v2  ;;  %1438 = vmatmul.msk.f32.vlgmr.msra.gmra.mxu1 %vm36_vm0, %v543_v2  ;;  %v1898_v2 = vld [vmem:[%s2073_s7 + $0x18] sm:$0xff] }
 0xda2   :  { %938 = vmatpush.msra.mxu1 %v1831_v62  ;;  %1377 = vmatpush.msrb.mxu0 %v1898_v2 }
 0xda4   :  { %939 = vmatpush.msra.mxu1 %v1836_v63 }
 0xda6   :  { %940 = vmatpush.msra.mxu1 %v1843_v0 }
 0xda8   :  { %v694_v4 = vld [vmem:[#allocation3 + $0x28] sm:$0xff]  ;;  %941 = vmatpush.msra.mxu1 %v1850_v1 }
 0xda9   :  { %1447 = vmatmul.msk.f32.gmra.mxu3 %vm36_vm0, %v694_v4  ;;  %1450 = vmatmul.msk.f32.vlgmr.msrb.gmra.mxu1 %vm36_vm0, %v783_v3  ;;  %v1903_v3 = vld [vmem:[%s2073_s7 + $0x10] sm:$0xff]  ;;  %v1909_v4 = vld [vmem:[%s2073_s7 + $0x8] sm:$0xff] }
 0xdaa   :  { %1070 = vmatpush.msrb.mxu1 %v1831_v62  ;;  %1378 = vmatpush.msrb.mxu0 %v1903_v3 }
 0xdac   :  { %1071 = vmatpush.msrb.mxu1 %v1836_v63  ;;  %1379 = vmatpush.msrb.mxu0 %v1909_v4 }
 0xdae   :  { %1072 = vmatpush.msrb.mxu1 %v1843_v0  ;;  %1380 = vmatpush.msrb.mxu0 %v1915_v5 }
 0xdb0   :  { %1073 = vmatpush.msrb.mxu1 %v1850_v1 }
 0xe1e   :  { %v568_v7 = vpop.f32.mrf.mxu1 }
 0xe1f   :  { %v571_v8 = vadd.f32 %v568_v7, %v116_v6 }
 0xe21   :  { %1537 = vtanh.f32 %v571_v8  ;;  %v1439_v21 = vmul.f32 -1.442695, %v571_v8 }
 0xe26   :  { %v807_v13 = vpop.f32.mrf.mxu1 }
 0xe27   :  { %v1538_v14 = vpop.eup %1537  ;;  %v810_v15 = vadd.f32 %v807_v13, %v747_v12  ;;  %v1936_v13 = vld [vmem:[%s2074_s8] ss:$0 sm:$0xff] }
 0xe28   :  { %594 = vrot.lane.b32.xlu1 %v1538_v14, %s1618_s23 }
 0xe29   :  { %1539 = vtanh.f32 %v810_v15  ;;  %v1451_v18 = vmul.f32 -1.442695, %v810_v15 }
 0xe2b   :  { %1541 = vpow2.f32 %v1451_v18 }
 0xe2f   :  { %v1540_v17 = vpop.eup %1539 }
 0xe30   :  { %832 = vrot.lane.b32.xlu1 %v785_v16, %s1618_s23  ;;  %837 = vrot.lane.b32.xlu2 %v1540_v17, %s1618_s23 }
 0xe31   :  { %v1542_v19 = vpop.eup %1541 }
 0xe32   :  { %v814_v20 = vadd.f32 1.0, %v1542_v19  ;;  %v749_v19 = vpop.f32.mrf.mxu3 }
 0xe34   :  { %1543 = vrcp.f32 %v814_v20  ;;  %v826_v30 = vand.u32 2147483648, %v814_v20  ;;  %vm820_vm13 = vweird.f32 %v814_v20  ;;  %v824_v31 = vand.u32 2147483647, %v814_v20 }
 0xe35   :  { %1545 = vpow2.f32 %v1439_v21 }
 0xe36   :  { %v827_v34 = vor.u32 1.1754944e-38, %v826_v30  ;;  %vm825_vm15 = vcmp.eq.f32.partialorder %v824_v31, 8.507059e+37 }
 0xe3a   :  { %v1544_v22 = vpop.eup %1543 }
 0xe3b   :  { %v1546_v23 = vpop.eup %1545  ;;  %v816_v24 = vmul.f32 %v1544_v22, %v814_v20  ;;  %vm821_vm12 = vweird.f32 %v1544_v22  ;;  %v750_v20 = vadd.f32 %v1872_v10, %v749_v19 }
 0xe3c   :  { %v575_v25 = vadd.f32 1.0, %v1546_v23  ;;  %vm822_vm14 = vmor %vm820_vm13, %vm821_vm12 }
 0xe3d   :  { %v817_v26 = vsub.f32 1.0, %v816_v24 }
 0xe3e   :  { %1547 = vrcp.f32 %v575_v25  ;;  %v587_v41 = vand.u32 2147483648, %v575_v25  ;;  %vm581_vm3 = vweird.f32 %v575_v25  ;;  %v585_v42 = vand.u32 2147483647, %v575_v25 }
 0xe3f   :  { %v818_v27 = vmul.f32 %v1544_v22, %v817_v26 }
 0xe40   :  { %v588_v44 = vor.u32 1.1754944e-38, %v587_v41  ;;  %vm586_vm5 = vcmp.eq.f32.partialorder %v585_v42, 8.507059e+37 }
 0xe41   :  { %v819_v28 = vadd.f32 %v1544_v22, %v818_v27 }
 0xe43   :  { %v823_v32 = vsel %vm822_vm14, %v1544_v22, %v819_v28 }
 0xe44   :  { %v1548_v29 = vpop.eup %1547  ;;  %v828_v36 = vsel %vm825_vm15, %v827_v34, %v823_v32 }
 0xe45   :  { %v577_v33 = vmul.f32 %v1548_v29, %v575_v25  ;;  %vm582_vm2 = vweird.f32 %v1548_v29 }
 0xe46   :  { %vm583_vm4 = vmor %vm581_vm3, %vm582_vm2 }
 0xe47   :  { %v578_v38 = vsub.f32 1.0, %v577_v33 }
 0xe49   :  { %v579_v39 = vmul.f32 %v1548_v29, %v578_v38 }
 0xe4b   :  { %v580_v40 = vadd.f32 %v1548_v29, %v579_v39 }
 0xe4d   :  { %v584_v43 = vsel %vm583_vm4, %v1548_v29, %v580_v40 }
 0xe4e   :  { %v589_v46 = vsel %vm586_vm5, %v588_v44, %v584_v43 }
 0xe4f   :  { %v592_v53 = vmul.f32 %v589_v46, %v1819_v57  ;;  %v48_v57 = vld [vmem:[%s2068_s0 + $0x38] sm:$0xff] }
 0xe50   :  { %1425 = vmatmul.msk.f32.gmra.mxu0 %vm55_vm1, %v48_v57 }
 0xe8a   :  { %v838_v35 = vpop.permute.xlu2 %837 }
 0xe8b   :  { %v840_v37 = vmul.f32 %v838_v35, %v828_v36 }
 0xe8d   :  { %842 = vrot.lane.b32.xlu2 %v840_v37, %s1618_s23 }
 0xe9a   :  { %v595_v45 = vpop.permute.xlu1 %594 }
 0xe9b   :  { %v597_v47 = vmul.f32 %v595_v45, %v589_v46 }
 0xe9d   :  { %599 = vrot.lane.b32.xlu0 %v597_v47, %s1618_s23 }
 0xea2   :  { %v833_v48 = vpop.permute.xlu1 %832 }
 0xea3   :  { %v835_v49 = vmul.f32 %v833_v48, %v828_v36 }
 0xecd   :  { %v118_v12 = vpop.f32.mrf.mxu0 }
 0xece   :  { %v119_v16 = vadd.f32 %v1737_v9, %v118_v12 }
 0xee7   :  { %v843_v50 = vpop.permute.xlu2 %842 }
 0xee8   :  { %v1880_v51 = vadd.f32 %v843_v50, %v835_v49 }
 0xeea   :  { %1549 = vtanh.f32 %v1880_v51 }
 0xef0   :  { %v1550_v52 = vpop.eup %1549 }
 0xef1   :  { %848 = vrot.lane.b32.xlu1 %v1550_v52, %s1618_s23 }
 0xf0f   :  { %v600_v54 = vpop.permute.xlu0 %599 }
 0xf10   :  { %v1885_v55 = vadd.f32 %v600_v54, %v592_v53 }
 0xf12   :  { %1551 = vtanh.f32 %v1885_v55 }
 0xf18   :  { %v1552_v56 = vpop.eup %1551 }
 0xf19   :  { %605 = vrot.lane.b32.xlu0 %v1552_v56, %s1618_s23 }
 0xf63   :  { %v849_v58 = vpop.permute.xlu1 %848 }
 0xf64   :  { %v851_v59 = vmul.f32 %v849_v58, %v828_v36 }
 0xf66   :  { %853 = vrot.lane.b32.xlu0 %v851_v59, %s1619_s3 }
 0xf8b   :  { %v606_v60 = vpop.permute.xlu0 %605 }
 0xf8c   :  { %v608_v61 = vmul.f32 %v606_v60, %v589_v46  ;;  %v752_v46 = vpop.f32.mrf.mxu3 }
 0xf8d   :  { %v753_v47 = vadd.f32 %v1872_v10, %v752_v46 }
 0xf8e   :  { %610 = vrot.lane.b32.xlu2 %v608_v61, %s1619_s3 }
 0xfd8   :  { %v854_v6 = vpop.permute.xlu0 %853 }
 0xfd9   :  { %856 = vst.msk [vmem:[#allocation3] sm:$0xff] %vm36_vm0, %v854_v6 }
 0xfe0   :  { %v1325_v7 = vld [vmem:[#allocation3] sm:$0xff] }
 0xfe1   :  { %1466 = vmatmul.msk.f32.vlgmr.msrb.gmra.mxu0 %vm36_vm0, %v1325_v7 }
 0xfe8   :  { %v611_v8 = vpop.permute.xlu2 %610 }
 0xfe9   :  { %614 = vst.msk [vmem:[#allocation3 + $0x30] sm:$0xff] %vm36_vm0, %v611_v8  ;;  %1440 = vmatmul.msk.f32.vlgmr.msra.gmra.mxu2 %vm36_vm0, %v611_v8 }
 0xfea   :  { %1004 = vmatpush.msra.mxu2 %v1831_v62 }
 0xfec   :  { %1005 = vmatpush.msra.mxu2 %v1836_v63 }
 0xfee   :  { %1006 = vmatpush.msra.mxu2 %v1843_v0 }
 0xff0   :  { %v695_v11 = vld [vmem:[#allocation3 + $0x30] sm:$0xff]  ;;  %1007 = vmatpush.msra.mxu2 %v1850_v1 }
 0xff1   :  { %1448 = vmatmul.msk.f32.gmra.mxu3 %vm36_vm0, %v695_v11  ;;  %1452 = vmatmul.msk.f32.vlgmr.msrb.gmra.mxu2 %vm36_vm0, %v854_v6 }
 0xff2   :  { %1136 = vmatpush.msrb.mxu2 %v1831_v62 }
 0xff4   :  { %1137 = vmatpush.msrb.mxu2 %v1836_v63 }
 0xff6   :  { %1138 = vmatpush.msrb.mxu2 %v1843_v0 }
 0xff8   :  { %1139 = vmatpush.msrb.mxu2 %v1850_v1 }
0x105e   :  { %v1382_v14 = vpop.f32.mrf.mxu0 }
0x105f   :  { %v1383_v15 = vadd.f32 %v1936_v13, %v1382_v14 }
0x1061   :  { %1406 = vst [vmem:[%s2075_s9] sm:$0xff] %v1383_v15 }
0x106c   :  { %v636_v17 = vpop.f32.mrf.mxu2 }
0x106d   :  { %v1943_v18 = vadd.f32 %v636_v17, %v119_v16 }
0x1074   :  { %v877_v21 = vpop.f32.mrf.mxu2 }
0x1075   :  { %v880_v22 = vadd.f32 %v877_v21, %v750_v20 }
0x1077   :  { %1553 = vtanh.f32 %v880_v22  ;;  %v1453_v24 = vmul.f32 -1.442695, %v880_v22 }
0x1079   :  { %1555 = vpow2.f32 %v1453_v24  ;;  %v755_v24 = vpop.f32.mrf.mxu3 }
0x107d   :  { %v1554_v23 = vpop.eup %1553 }
0x107e   :  { %903 = vrot.lane.b32.xlu1 %v1554_v23, %s1618_s23 }
0x107f   :  { %v1556_v25 = vpop.eup %1555 }
0x1080   :  { %v884_v26 = vadd.f32 1.0, %v1556_v25  ;;  %v756_v25 = vadd.f32 %v1872_v10, %v755_v24 }
0x1081   :  { %v758_v46 = vpop.f32.mrf.mxu3 }
0x1082   :  { %1557 = vrcp.f32 %v884_v26  ;;  %v896_v31 = vand.u32 2147483648, %v884_v26  ;;  %vm890_vm6 = vweird.f32 %v884_v26  ;;  %v894_v32 = vand.u32 2147483647, %v884_v26 }
0x1084   :  { %v897_v34 = vor.u32 1.1754944e-38, %v896_v31  ;;  %vm895_vm8 = vcmp.eq.f32.partialorder %v894_v32, 8.507059e+37 }
0x1088   :  { %v1558_v27 = vpop.eup %1557 }
0x1089   :  { %v886_v28 = vmul.f32 %v1558_v27, %v884_v26  ;;  %vm891_vm1 = vweird.f32 %v1558_v27 }
0x108a   :  { %vm892_vm7 = vmor %vm890_vm6, %vm891_vm1 }
0x108b   :  { %v887_v9 = vsub.f32 1.0, %v886_v28 }
0x108d   :  { %v888_v29 = vmul.f32 %v1558_v27, %v887_v9 }
0x108f   :  { %v889_v30 = vadd.f32 %v1558_v27, %v888_v29 }
0x1091   :  { %v893_v33 = vsel %vm892_vm7, %v1558_v27, %v889_v30 }
0x1092   :  { %v898_v36 = vsel %vm895_vm8, %v897_v34, %v893_v33 }
0x1093   :  { %v901_v38 = vmul.f32 %v898_v36, %v1880_v51 }
0x10f0   :  { %v904_v35 = vpop.permute.xlu1 %903 }
0x10f1   :  { %v906_v37 = vmul.f32 %v904_v35, %v898_v36 }
0x10f3   :  { %908 = vrot.lane.b32.xlu2 %v906_v37, %s1618_s23 }
0x114d   :  { %v909_v39 = vpop.permute.xlu2 %908 }
0x114e   :  { %v911_v40 = vadd.f32 %v909_v39, %v901_v38 }
0x1150   :  { %1559 = vtanh.f32 %v911_v40 }
0x1156   :  { %v1560_v41 = vpop.eup %1559 }
0x1157   :  { %914 = vrot.lane.b32.xlu0 %v1560_v41, %s1618_s23 }
0x11c9   :  { %v915_v42 = vpop.permute.xlu0 %914 }
0x11ca   :  { %v917_v43 = vmul.f32 %v915_v42, %v898_v36 }
0x11cc   :  { %919 = vrot.lane.b32.xlu1 %v917_v43, %s1619_s3 }
0x123e   :  { %v920_v44 = vpop.permute.xlu1 %919 }
0x123f   :  { %922 = vst.msk [vmem:[#allocation3 + $0x8] sm:$0xff] %vm36_vm0, %v920_v44  ;;  %1454 = vmatmul.msk.f32.vlgmr.msra.gmra.mxu1 %vm36_vm0, %v920_v44 }
0x1240   :  { %1202 = vmatpush.msra.mxu1 %v1831_v62 }
0x1242   :  { %1203 = vmatpush.msra.mxu1 %v1836_v63 }
0x1244   :  { %1204 = vmatpush.msra.mxu1 %v1843_v0 }
0x1246   :  { %v1326_v45 = vld [vmem:[#allocation3 + $0x8] sm:$0xff]  ;;  %1205 = vmatpush.msra.mxu1 %v1850_v1 }
0x1247   :  { %1467 = vmatmul.msk.f32.gmra.mxu0 %vm36_vm0, %v1326_v45 }
0x12bc   :  { %v943_v48 = vpop.f32.mrf.mxu1 }
0x12bd   :  { %v946_v49 = vadd.f32 %v943_v48, %v753_v47  ;;  %v759_v47 = vadd.f32 %v1872_v10, %v758_v46 }
0x12bf   :  { %1561 = vtanh.f32 %v946_v49  ;;  %v1455_v53 = vmul.f32 -1.442695, %v946_v49 }
0x12c1   :  { %1563 = vpow2.f32 %v1455_v53 }
0x12c4   :  { %v1385_v50 = vpop.f32.mrf.mxu0 }
0x12c5   :  { %v1562_v51 = vpop.eup %1561  ;;  %v1386_v52 = vadd.f32 %v1936_v13, %v1385_v50 }
0x12c6   :  { %969 = vrot.lane.b32.xlu2 %v1562_v51, %s1618_s23 }
0x12c7   :  { %1407 = vst [vmem:[%s2075_s9 + $0x8] sm:$0xff] %v1386_v52  ;;  %v1564_v54 = vpop.eup %1563 }
0x12c8   :  { %v950_v56 = vadd.f32 1.0, %v1564_v54 }
0x12ca   :  { %1565 = vrcp.f32 %v950_v56  ;;  %v962_v6 = vand.u32 2147483648, %v950_v56  ;;  %vm956_vm10 = vweird.f32 %v950_v56  ;;  %v960_v7 = vand.u32 2147483647, %v950_v56 }
0x12cc   :  { %v963_v11 = vor.u32 1.1754944e-38, %v962_v6  ;;  %vm961_vm12 = vcmp.eq.f32.partialorder %v960_v7, 8.507059e+37 }
0x12d0   :  { %v1566_v58 = vpop.eup %1565 }
0x12d1   :  { %v952_v59 = vmul.f32 %v1566_v58, %v950_v56  ;;  %vm957_vm9 = vweird.f32 %v1566_v58 }
0x12d2   :  { %vm958_vm11 = vmor %vm956_vm10, %vm957_vm9 }
0x12d3   :  { %v953_v60 = vsub.f32 1.0, %v952_v59 }
0x12d5   :  { %v954_v61 = vmul.f32 %v1566_v58, %v953_v60 }
0x12d7   :  { %v955_v57 = vadd.f32 %v1566_v58, %v954_v61 }
0x12d9   :  { %v959_v8 = vsel %vm958_vm11, %v1566_v58, %v955_v57 }
0x12da   :  { %v964_v14 = vsel %vm961_vm12, %v963_v11, %v959_v8 }
0x12db   :  { %v967_v16 = vmul.f32 %v964_v14, %v911_v40 }
0x1320   :  { %v970_v12 = vpop.permute.xlu2 %969 }
0x1321   :  { %v972_v15 = vmul.f32 %v970_v12, %v964_v14 }
0x1323   :  { %974 = vrot.lane.b32.xlu0 %v972_v15, %s1618_s23 }
0x1395   :  { %v975_v17 = vpop.permute.xlu0 %974 }
0x1396   :  { %v977_v19 = vadd.f32 %v975_v17, %v967_v16 }
0x1398   :  { %1567 = vtanh.f32 %v977_v19 }
0x139e   :  { %v1568_v20 = vpop.eup %1567 }
0x139f   :  { %980 = vrot.lane.b32.xlu1 %v1568_v20, %s1618_s23 }
0x1411   :  { %v981_v21 = vpop.permute.xlu1 %980 }
0x1412   :  { %v983_v22 = vmul.f32 %v981_v21, %v964_v14 }
0x1414   :  { %985 = vrot.lane.b32.xlu2 %v983_v22, %s1619_s3  ;;  %v761_v22 = vpop.f32.mrf.mxu3 }
0x146e   :  { %v986_v23 = vpop.permute.xlu2 %985 }
0x146f   :  { %988 = vst.msk [vmem:[#allocation3 + $0x10] sm:$0xff] %vm36_vm0, %v986_v23  ;;  %1456 = vmatmul.msk.f32.vlgmr.msra.gmra.mxu2 %vm36_vm0, %v986_v23  ;;  %v762_v23 = vadd.f32 %v1872_v10, %v761_v22 }
0x1470   :  { %1268 = vmatpush.msra.mxu2 %v1831_v62 }
0x1472   :  { %1269 = vmatpush.msra.mxu2 %v1836_v63 }
0x1474   :  { %1270 = vmatpush.msra.mxu2 %v1843_v0 }
0x1476   :  { %1271 = vmatpush.msra.mxu2 %v1850_v1 }
0x14f2   :  { %v1009_v26 = vpop.f32.mrf.mxu2 }
0x14f3   :  { %v1012_v27 = vadd.f32 %v1009_v26, %v756_v25 }
0x14f5   :  { %1569 = vtanh.f32 %v1012_v27  ;;  %v1457_v9 = vmul.f32 -1.442695, %v1012_v27 }
0x14f7   :  { %1571 = vpow2.f32 %v1457_v9 }
0x14fb   :  { %v1570_v28 = vpop.eup %1569 }
0x14fc   :  { %1035 = vrot.lane.b32.xlu0 %v1570_v28, %s1618_s23 }
0x14fd   :  { %v1572_v29 = vpop.eup %1571 }
0x14fe   :  { %v1016_v30 = vadd.f32 1.0, %v1572_v29 }
0x1500   :  { %1573 = vrcp.f32 %v1016_v30  ;;  %v1028_v1 = vand.u32 2147483648, %v1016_v30  ;;  %vm1022_vm14 = vweird.f32 %v1016_v30  ;;  %v1026_v33 = vand.u32 2147483647, %v1016_v30 }
0x1502   :  { %v1029_v35 = vor.u32 1.1754944e-38, %v1028_v1  ;;  %vm1027_vm2 = vcmp.eq.f32.partialorder %v1026_v33, 8.507059e+37 }
0x1506   :  { %v1574_v62 = vpop.eup %1573 }
0x1507   :  { %v1018_v63 = vmul.f32 %v1574_v62, %v1016_v30  ;;  %vm1023_vm13 = vweird.f32 %v1574_v62 }
0x1508   :  { %vm1024_vm15 = vmor %vm1022_vm14, %vm1023_vm13 }
0x1509   :  { %v1019_v31 = vsub.f32 1.0, %v1018_v63 }
0x150b   :  { %v1020_v0 = vmul.f32 %v1574_v62, %v1019_v31 }
0x150d   :  { %v1021_v32 = vadd.f32 %v1574_v62, %v1020_v0 }
0x150f   :  { %v1025_v34 = vsel %vm1024_vm15, %v1574_v62, %v1021_v32 }
0x1510   :  { %v1030_v37 = vsel %vm1027_vm2, %v1029_v35, %v1025_v34 }
0x1511   :  { %v1033_v39 = vmul.f32 %v1030_v37, %v977_v19 }
0x156e   :  { %v1036_v36 = vpop.permute.xlu0 %1035 }
0x156f   :  { %v1038_v38 = vmul.f32 %v1036_v36, %v1030_v37 }
0x1571   :  { %1040 = vrot.lane.b32.xlu1 %v1038_v38, %s1618_s23  ;;  %v1441_v38 = vmul.f32 -1.442695, %v1943_v18 }
0x15e3   :  { %v1041_v40 = vpop.permute.xlu1 %1040 }
0x15e4   :  { %v1043_v41 = vadd.f32 %v1041_v40, %v1033_v39 }
0x15e6   :  { %1575 = vtanh.f32 %v1043_v41 }
0x15ec   :  { %v1576_v42 = vpop.eup %1575 }
0x15ed   :  { %1046 = vrot.lane.b32.xlu2 %v1576_v42, %s1618_s23 }
0x1647   :  { %v1047_v43 = vpop.permute.xlu2 %1046 }
0x1648   :  { %v1049_v44 = vmul.f32 %v1047_v43, %v1030_v37 }
0x164a   :  { %1051 = vrot.lane.b32.xlu0 %v1049_v44, %s1619_s3 }
0x16bc   :  { %v1052_v45 = vpop.permute.xlu0 %1051 }
0x16bd   :  { %1054 = vst.msk [vmem:[#allocation3 + $0x18] sm:$0xff] %vm36_vm0, %v1052_v45  ;;  %1458 = vmatmul.msk.f32.vlgmr.msrb.gmra.mxu1 %vm36_vm0, %v1052_v45 }
0x16be   :  { %1474 = vmatpush.msrb.mxu1 %v1898_v2 }
0x16c0   :  { %1476 = vmatpush.msrb.mxu1 %v1903_v3 }
0x16c2   :  { %1478 = vmatpush.msrb.mxu1 %v1909_v4 }
0x16c4   :  { %1480 = vmatpush.msrb.mxu1 %v1915_v5 }
0x173a   :  { %v1075_v48 = vpop.f32.mrf.mxu1 }
0x173b   :  { %v1078_v49 = vadd.f32 %v1075_v48, %v759_v47 }
0x173d   :  { %1577 = vtanh.f32 %v1078_v49  ;;  %v1459_v51 = vmul.f32 -1.442695, %v1078_v49 }
0x173f   :  { %1579 = vpow2.f32 %v1459_v51 }
0x1743   :  { %v1578_v50 = vpop.eup %1577 }
0x1744   :  { %1101 = vrot.lane.b32.xlu1 %v1578_v50, %s1618_s23 }
0x1745   :  { %v1580_v52 = vpop.eup %1579 }
0x1746   :  { %v1082_v53 = vadd.f32 1.0, %v1580_v52 }
0x1748   :  { %1581 = vrcp.f32 %v1082_v53  ;;  %v1094_v61 = vand.u32 2147483648, %v1082_v53  ;;  %vm1088_vm4 = vweird.f32 %v1082_v53  ;;  %v1092_v57 = vand.u32 2147483647, %v1082_v53 }
0x174a   :  { %v1095_v7 = vor.u32 1.1754944e-38, %v1094_v61  ;;  %vm1093_vm1 = vcmp.eq.f32.partialorder %v1092_v57, 8.507059e+37 }
0x174e   :  { %v1582_v54 = vpop.eup %1581 }
0x174f   :  { %v1084_v56 = vmul.f32 %v1582_v54, %v1082_v53  ;;  %vm1089_vm3 = vweird.f32 %v1582_v54 }
0x1750   :  { %vm1090_vm5 = vmor %vm1088_vm4, %vm1089_vm3 }
0x1751   :  { %v1085_v58 = vsub.f32 1.0, %v1084_v56  ;;  %v1327_v56 = vld [vmem:[#allocation3 + $0x10] sm:$0xff] }
0x1753   :  { %v1086_v59 = vmul.f32 %v1582_v54, %v1085_v58  ;;  %v1328_v58 = vld [vmem:[#allocation3 + $0x18] sm:$0xff] }
0x1755   :  { %v1087_v60 = vadd.f32 %v1582_v54, %v1086_v59 }
0x1757   :  { %v1091_v6 = vsel %vm1090_vm5, %v1582_v54, %v1087_v60  ;;  %v764_v60 = vpop.f32.mrf.mxu3 }
0x1758   :  { %v1096_v11 = vsel %vm1093_vm1, %v1095_v7, %v1091_v6  ;;  %v765_v61 = vadd.f32 %v1872_v10, %v764_v60 }
0x1759   :  { %v1099_v14 = vmul.f32 %v1096_v11, %v1043_v41 }
0x17b6   :  { %v1102_v8 = vpop.permute.xlu1 %1101 }
0x17b7   :  { %v1104_v12 = vmul.f32 %v1102_v8, %v1096_v11 }
0x17b9   :  { %1106 = vrot.lane.b32.xlu2 %v1104_v12, %s1618_s23 }
0x1813   :  { %v1107_v15 = vpop.permute.xlu2 %1106 }
0x1814   :  { %v1109_v16 = vadd.f32 %v1107_v15, %v1099_v14 }
0x1816   :  { %1583 = vtanh.f32 %v1109_v16 }
0x181c   :  { %v1584_v17 = vpop.eup %1583 }
0x181d   :  { %1112 = vrot.lane.b32.xlu0 %v1584_v17, %s1618_s23 }
0x188f   :  { %v1113_v19 = vpop.permute.xlu0 %1112 }
0x1890   :  { %v1115_v20 = vmul.f32 %v1113_v19, %v1096_v11 }
0x1892   :  { %1117 = vrot.lane.b32.xlu1 %v1115_v20, %s1619_s3 }
0x1904   :  { %v1118_v21 = vpop.permute.xlu1 %1117 }
0x1905   :  { %1120 = vst.msk [vmem:[#allocation3 + $0x20] sm:$0xff] %vm36_vm0, %v1118_v21  ;;  %1460 = vmatmul.msk.f32.vlgmr.msrb.gmra.mxu2 %vm36_vm0, %v1118_v21 }
0x1906   :  { %1475 = vmatpush.msrb.mxu2 %v1898_v2 }
0x1908   :  { %1477 = vmatpush.msrb.mxu2 %v1903_v3 }
0x190a   :  { %1479 = vmatpush.msrb.mxu2 %v1909_v4 }
0x190c   :  { %1481 = vmatpush.msrb.mxu2 %v1915_v5  ;;  %v1329_v59 = vld [vmem:[#allocation3 + $0x20] sm:$0xff] }
0x1988   :  { %v1141_v24 = vpop.f32.mrf.mxu2 }
0x1989   :  { %v1144_v25 = vadd.f32 %v1141_v24, %v762_v23 }
0x198b   :  { %1585 = vtanh.f32 %v1144_v25  ;;  %v1461_v27 = vmul.f32 -1.442695, %v1144_v25 }
0x198d   :  { %1587 = vpow2.f32 %v1461_v27 }
0x1991   :  { %v1586_v26 = vpop.eup %1585 }
0x1992   :  { %1167 = vrot.lane.b32.xlu2 %v1586_v26, %s1618_s23 }
0x1993   :  { %v1588_v28 = vpop.eup %1587 }
0x1994   :  { %v1148_v9 = vadd.f32 1.0, %v1588_v28 }
0x1996   :  { %1589 = vrcp.f32 %v1148_v9  ;;  %v1160_v5 = vand.u32 2147483648, %v1148_v9  ;;  %vm1154_vm7 = vweird.f32 %v1148_v9  ;;  %v1158_v62 = vand.u32 2147483647, %v1148_v9 }
0x1997   :  { %1591 = vtanh.f32 %v1943_v18 }
0x1998   :  { %v1161_v31 = vor.u32 1.1754944e-38, %v1160_v5  ;;  %vm1159_vm9 = vcmp.eq.f32.partialorder %v1158_v62, 8.507059e+37 }
0x199c   :  { %v1590_v2 = vpop.eup %1589 }
0x199d   :  { %v1150_v3 = vmul.f32 %v1590_v2, %v1148_v9  ;;  %vm1155_vm6 = vweird.f32 %v1590_v2  ;;  %v1592_v33 = vpop.eup %1591 }
0x199e   :  { %vm1156_vm8 = vmor %vm1154_vm7, %vm1155_vm6 }
0x199f   :  { %v1151_v29 = vsub.f32 1.0, %v1150_v3 }
0x19a1   :  { %v1152_v4 = vmul.f32 %v1590_v2, %v1151_v29 }
0x19a3   :  { %v1153_v30 = vadd.f32 %v1590_v2, %v1152_v4 }
0x19a5   :  { %v1157_v63 = vsel %vm1156_vm8, %v1590_v2, %v1153_v30 }
0x19a6   :  { %v1162_v32 = vsel %vm1159_vm9, %v1161_v31, %v1157_v63 }
0x19a7   :  { %v1165_v34 = vmul.f32 %v1162_v32, %v1109_v16 }
0x19ec   :  { %v1168_v0 = vpop.permute.xlu2 %1167 }
0x19ed   :  { %v1170_v1 = vmul.f32 %v1168_v0, %v1162_v32 }
0x19ef   :  { %1172 = vrot.lane.b32.xlu0 %v1170_v1, %s1618_s23 }
0x19f7   :  { %662 = vrot.lane.b32.xlu0 %v1592_v33, %s1618_s23 }
0x1a61   :  { %v1173_v35 = vpop.permute.xlu0 %1172 }
0x1a62   :  { %v2000_v36 = vadd.f32 %v1173_v35, %v1165_v34 }
0x1a64   :  { %1593 = vtanh.f32 %v2000_v36 }
0x1a65   :  { %1595 = vpow2.f32 %v1441_v38 }
0x1a69   :  { %v663_v51 = vpop.permute.xlu0 %662 }
0x1a6a   :  { %v1594_v37 = vpop.eup %1593 }
0x1a6b   :  { %1178 = vrot.lane.b32.xlu1 %v1594_v37, %s1618_s23  ;;  %v1596_v39 = vpop.eup %1595 }
0x1a6c   :  { %v643_v40 = vadd.f32 1.0, %v1596_v39 }
0x1a6e   :  { %1597 = vrcp.f32 %v643_v40  ;;  %v655_v48 = vand.u32 2147483648, %v643_v40  ;;  %vm649_vm11 = vweird.f32 %v643_v40  ;;  %v653_v49 = vand.u32 2147483647, %v643_v40 }
0x1a70   :  { %v656_v18 = vor.u32 1.1754944e-38, %v655_v48  ;;  %vm654_vm13 = vcmp.eq.f32.partialorder %v653_v49, 8.507059e+37 }
0x1a74   :  { %v1598_v41 = vpop.eup %1597 }
0x1a75   :  { %v645_v42 = vmul.f32 %v1598_v41, %v643_v40  ;;  %vm650_vm10 = vweird.f32 %v1598_v41 }
0x1a76   :  { %vm651_vm12 = vmor %vm649_vm11, %vm650_vm10 }
0x1a77   :  { %v646_v43 = vsub.f32 1.0, %v645_v42 }
0x1a79   :  { %v647_v44 = vmul.f32 %v1598_v41, %v646_v43 }
0x1a7b   :  { %v648_v46 = vadd.f32 %v1598_v41, %v647_v44 }
0x1a7d   :  { %v652_v50 = vsel %vm651_vm12, %v1598_v41, %v648_v46 }
0x1a7e   :  { %v657_v52 = vsel %vm654_vm13, %v656_v18, %v652_v50 }
0x1a7f   :  { %v665_v53 = vmul.f32 %v663_v51, %v657_v52  ;;  %v660_v8 = vmul.f32 %v657_v52, %v1885_v55 }
0x1add   :  { %v1179_v45 = vpop.permute.xlu1 %1178 }
0x1ade   :  { %v1181_v47 = vmul.f32 %v1179_v45, %v1162_v32 }
0x1ae0   :  { %1183 = vrot.lane.b32.xlu2 %v1181_v47, %s1619_s3 }
0x1ae8   :  { %667 = vrot.lane.b32.xlu2 %v665_v53, %s1618_s23 }
0x1b3a   :  { %v1184_v54 = vpop.permute.xlu2 %1183 }
0x1b3b   :  { %1186 = vst.msk [vmem:[#allocation3 + $0x28] sm:$0xff] %vm36_vm0, %v1184_v54  ;;  %1462 = vmatmul.msk.f32.vlgmr.msra.gmra.mxu1 %vm36_vm0, %v1184_v54 }
0x1b42   :  { %v668_v7 = vpop.permute.xlu2 %667 }
0x1b43   :  { %1468 = vmatmul.msk.f32.vlgmr.msrb.gmra.mxu1 %vm36_vm0, %v1327_v56  ;;  %v2014_v11 = vadd.f32 %v668_v7, %v660_v8 }
0x1b4b   :  { %1469 = vmatmul.msk.f32.gmra.mxu1 %vm36_vm0, %v1328_v58 }
0x1b53   :  { %1470 = vmatmul.msk.f32.gmra.mxu1 %vm36_vm0, %v1329_v59 }
0x1bb8   :  { %v1207_v57 = vpop.f32.mrf.mxu1 }
0x1bb9   :  { %v1210_v6 = vadd.f32 %v1207_v57, %v765_v61 }
0x1bbb   :  { %1599 = vtanh.f32 %v1210_v6  ;;  %v1463_v21 = vmul.f32 -1.442695, %v1210_v6 }
0x1bbc   :  { %1601 = vtanh.f32 %v2014_v11 }
0x1bbd   :  { %1603 = vpow2.f32 %v1463_v21 }
0x1bc0   :  { %v1388_v12 = vpop.f32.mrf.mxu1 }
0x1bc1   :  { %v1600_v14 = vpop.eup %1599  ;;  %v1389_v15 = vadd.f32 %v1936_v13, %v1388_v12 }
0x1bc2   :  { %1233 = vrot.lane.b32.xlu1 %v1600_v14, %s1618_s23  ;;  %v1602_v17 = vpop.eup %1601 }
0x1bc3   :  { %1408 = vst [vmem:[%s2075_s9 + $0x10] sm:$0xff] %v1389_v15  ;;  %v1604_v22 = vpop.eup %1603 }
0x1bc4   :  { %v1214_v23 = vadd.f32 1.0, %v1604_v22 }
0x1bc6   :  { %1605 = vrcp.f32 %v1214_v23  ;;  %v1226_v9 = vand.u32 2147483648, %v1214_v23  ;;  %vm1220_vm15 = vweird.f32 %v1214_v23  ;;  %v1224_v2 = vand.u32 2147483647, %v1214_v23 }
0x1bc8   :  { %v1391_v16 = vpop.f32.mrf.mxu1  ;;  %v1227_v29 = vor.u32 1.1754944e-38, %v1226_v9  ;;  %vm1225_vm3 = vcmp.eq.f32.partialorder %v1224_v2, 8.507059e+37 }
0x1bc9   :  { %v1392_v19 = vadd.f32 %v1936_v13, %v1391_v16 }
0x1bca   :  { %673 = vrot.lane.b32.xlu1 %v1602_v17, %s1618_s23 }
0x1bcb   :  { %1409 = vst [vmem:[%s2075_s9 + $0x18] sm:$0xff] %v1392_v19 }
0x1bcc   :  { %v1606_v24 = vpop.eup %1605 }
0x1bcd   :  { %v1216_v25 = vmul.f32 %v1606_v24, %v1214_v23  ;;  %vm1221_vm14 = vweird.f32 %v1606_v24 }
0x1bce   :  { %vm1222_vm2 = vmor %vm1220_vm15, %vm1221_vm14 }
0x1bcf   :  { %v1217_v26 = vsub.f32 1.0, %v1216_v25 }
0x1bd0   :  { %v1394_v55 = vpop.f32.mrf.mxu1 }
0x1bd1   :  { %v1395_v20 = vadd.f32 %v1936_v13, %v1394_v55  ;;  %v1218_v27 = vmul.f32 %v1606_v24, %v1217_v26 }
0x1bd3   :  { %1410 = vst [vmem:[%s2075_s9 + $0x20] sm:$0xff] %v1395_v20  ;;  %v1219_v28 = vadd.f32 %v1606_v24, %v1218_v27 }
0x1bd5   :  { %v1223_v3 = vsel %vm1222_vm2, %v1606_v24, %v1219_v28 }
0x1bd6   :  { %v1228_v30 = vsel %vm1225_vm3, %v1227_v29, %v1223_v3 }
0x1bd7   :  { %v1231_v31 = vmul.f32 %v1228_v30, %v2000_v36  ;;  %v1330_v36 = vld [vmem:[#allocation3 + $0x28] sm:$0xff] }
0x1c34   :  { %v1234_v4 = vpop.permute.xlu1 %1233 }
0x1c35   :  { %v1236_v5 = vmul.f32 %v1234_v4, %v1228_v30 }
0x1c37   :  { %1238 = vrot.lane.b32.xlu0 %v1236_v5, %s1618_s23 }
0x1c3c   :  { %v674_v62 = vpop.permute.xlu1 %673 }
0x1c3d   :  { %v676_v63 = vmul.f32 %v674_v62, %v657_v52 }
0x1c3f   :  { %678 = vrot.lane.b32.xlu0 %v676_v63, %s1619_s3 }
0x1ca9   :  { %v1239_v0 = vpop.permute.xlu0 %1238 }
0x1caa   :  { %v1241_v32 = vadd.f32 %v1239_v0, %v1231_v31 }
0x1cac   :  { %1607 = vtanh.f32 %v1241_v32 }
0x1cb1   :  { %v679_v1 = vpop.permute.xlu0 %678 }
0x1cb2   :  { %v1608_v33 = vpop.eup %1607  ;;  %682 = vst.msk [vmem:[#allocation3 + $0x38] sm:$0xff] %vm36_vm0, %v679_v1 }
0x1cb3   :  { %683 = vst.msk [vmem:[#allocation4] sm:$0xff] %vm36_vm0, %v679_v1  ;;  %1244 = vrot.lane.b32.xlu2 %v1608_v33, %s1618_s23 }
0x1cb9   :  { %v696_v34 = vld [vmem:[#allocation3 + $0x38] sm:$0xff] }
0x1cba   :  { %1449 = vmatmul.msk.f32.gmra.mxu3 %vm36_vm0, %v696_v34 }
0x1d0d   :  { %v1245_v35 = vpop.permute.xlu2 %1244 }
0x1d0e   :  { %v1247_v37 = vmul.f32 %v1245_v35, %v1228_v30 }
0x1d10   :  { %1249 = vrot.lane.b32.xlu1 %v1247_v37, %s1619_s3 }
0x1d3d   :  { %v767_v40 = vpop.f32.mrf.mxu3 }
0x1d3e   :  { %v768_v41 = vadd.f32 %v1872_v10, %v767_v40 }
0x1d82   :  { %v1250_v38 = vpop.permute.xlu1 %1249 }
0x1d83   :  { %1252 = vst.msk [vmem:[#allocation3 + $0x30] sm:$0xff] %vm36_vm0, %v1250_v38  ;;  %1464 = vmatmul.msk.f32.vlgmr.msra.gmra.mxu2 %vm36_vm0, %v1250_v38 }
0x1d8a   :  { %v1331_v39 = vld [vmem:[#allocation3 + $0x30] sm:$0xff] }
0x1d8b   :  { %1471 = vmatmul.msk.f32.vlgmr.msrb.gmra.mxu2 %vm36_vm0, %v1330_v36 }
0x1d93   :  { %1472 = vmatmul.msk.f32.gmra.mxu2 %vm36_vm0, %v1331_v39 }
0x1e06   :  { %v1273_v42 = vpop.f32.mrf.mxu2 }
0x1e07   :  { %v1276_v43 = vadd.f32 %v1273_v42, %v768_v41 }
0x1e09   :  { %1609 = vtanh.f32 %v1276_v43  ;;  %v1465_v10 = vmul.f32 -1.442695, %v1276_v43 }
0x1e0b   :  { %1611 = vpow2.f32 %v1465_v10 }
0x1e0e   :  { %v1397_v44 = vpop.f32.mrf.mxu2 }
0x1e0f   :  { %v1610_v45 = vpop.eup %1609  ;;  %v1398_v46 = vadd.f32 %v1936_v13, %v1397_v44 }
0x1e10   :  { %1299 = vrot.lane.b32.xlu2 %v1610_v45, %s1618_s23 }
0x1e11   :  { %1411 = vst [vmem:[%s2075_s9 + $0x28] sm:$0xff] %v1398_v46  ;;  %v1612_v49 = vpop.eup %1611 }
0x1e12   :  { %v1280_v50 = vadd.f32 1.0, %v1612_v49 }
0x1e14   :  { %1613 = vrcp.f32 %v1280_v50  ;;  %v1292_v56 = vand.u32 2147483648, %v1280_v50  ;;  %vm1286_vm5 = vweird.f32 %v1280_v50  ;;  %v1290_v58 = vand.u32 2147483647, %v1280_v50 }
0x1e16   :  { %v1400_v47 = vpop.f32.mrf.mxu2  ;;  %v1293_v60 = vor.u32 1.1754944e-38, %v1292_v56  ;;  %vm1291_vm6 = vcmp.eq.f32.partialorder %v1290_v58, 8.507059e+37 }
0x1e17   :  { %v1401_v48 = vadd.f32 %v1936_v13, %v1400_v47 }
0x1e19   :  { %1412 = vst [vmem:[%s2075_s9 + $0x30] sm:$0xff] %v1401_v48 }
0x1e1a   :  { %v1614_v18 = vpop.eup %1613 }
0x1e1b   :  { %v1282_v51 = vmul.f32 %v1614_v18, %v1280_v50  ;;  %vm1287_vm4 = vweird.f32 %v1614_v18 }
0x1e1c   :  { %vm1288_vm1 = vmor %vm1286_vm5, %vm1287_vm4 }
0x1e1d   :  { %v1283_v52 = vsub.f32 1.0, %v1282_v51 }
0x1e1f   :  { %v1284_v53 = vmul.f32 %v1614_v18, %v1283_v52 }
0x1e21   :  { %v1285_v54 = vadd.f32 %v1614_v18, %v1284_v53 }
0x1e23   :  { %v1289_v59 = vsel %vm1288_vm1, %v1614_v18, %v1285_v54 }
0x1e24   :  { %v1294_v57 = vsel %vm1291_vm6, %v1293_v60, %v1289_v59 }
0x1e25   :  { %v1297_v7 = vmul.f32 %v1294_v57, %v1241_v32 }
0x1e6a   :  { %v1300_v61 = vpop.permute.xlu2 %1299 }
0x1e6b   :  { %v1302_v6 = vmul.f32 %v1300_v61, %v1294_v57 }
0x1e6d   :  { %1304 = vrot.lane.b32.xlu0 %v1302_v6, %s1618_s23 }
0x1e75   :  { %685 = vrot.lane.b32.xlu0 %v2014_v11, %s1620_s5 }
0x1edf   :  { %v1305_v8 = vpop.permute.xlu0 %1304 }
0x1ee0   :  { %v1307_v12 = vadd.f32 %v1305_v8, %v1297_v7 }
0x1ee2   :  { %1615 = vtanh.f32 %v1307_v12 }
0x1ee7   :  { %v686_v14 = vpop.permute.xlu0 %685 }
0x1ee8   :  { %v1616_v15 = vpop.eup %1615  ;;  %688 = vst.msk [vmem:[#allocation5] sm:$0xff] %vm36_vm0, %v686_v14 }
0x1ee9   :  { %1310 = vrot.lane.b32.xlu1 %v1616_v15, %s1618_s23 }
0x1ef1   :  { %1321 = vrot.lane.b32.xlu1 %v1307_v12, %s1620_s5 }
0x1f5b   :  { %v1311_v16 = vpop.permute.xlu1 %1310 }
0x1f5c   :  { %v1313_v17 = vmul.f32 %v1311_v16, %v1294_v57 }
0x1f5e   :  { %1315 = vrot.lane.b32.xlu2 %v1313_v17, %s1619_s3 }
0x1f63   :  { %v1322_v19 = vpop.permute.xlu1 %1321 }
0x1f64   :  { %1324 = vst.msk [vmem:[#allocation5 + $0x8] sm:$0xff] %vm36_vm0, %v1322_v19 }
0x1fb8   :  { %v1316_v55 = vpop.permute.xlu2 %1315 }
0x1fb9   :  { %1318 = vst.msk [vmem:[#allocation3 + $0x38] sm:$0xff] %vm36_vm0, %v1316_v55 }
0x1fba   :  { %1319 = vst.msk [vmem:[#allocation4 + $0x8] sm:$0xff] %vm36_vm0, %v1316_v55 }
0x1fc0   :  { %v1332_v11 = vld [vmem:[#allocation3 + $0x38] sm:$0xff] }
0x1fc1   :  { %1473 = vmatmul.msk.f32.gmra.mxu2 %vm36_vm0, %v1332_v11 }
0x2044   :  { %v1403_v20 = vpop.f32.mrf.mxu2 }
0x2045   :  { %v1404_v21 = vadd.f32 %v1936_v13, %v1403_v20 }
0x2047   :  { %1413 = vst [vmem:[%s2075_s9 + $0x38] sm:$0xff] %v1404_v21 }

</bundles_post_ra>
